<compile_context>
chip_gen: v7x
topology: tpu7x:2x2x1
jax: 0.10.0
libtpu: 0.0.40
codegen_flags: <defaults>
</compile_context>

<pallas_src>
import functools

import jax
import jax.numpy as jnp
from jax import lax
from jax.experimental import pallas as pl
from jax.experimental.pallas import tpu as pltpu


def _round_up(x, m):
    return (x + m - 1) // m * m


def _pick_sub_batch(Bp):
    """Batch sub-tile for the recurrence.

    Large Bp: full-height MXU tiles (occupancy regime).  Small Bp: split into
    2-4 independent sub-tiles whose carries are interleaved inside each step so
    the MXU latency of one tile hides under the EUP/VPU of another.
    Always returns a multiple of 8 that divides Bp.
    """
    if Bp >= 128 and Bp % 128 == 0:
        return 128
    if Bp >= 32 and Bp % 32 == 0:
        return Bp // 4
    if Bp >= 16 and Bp % 16 == 0:
        return Bp // 2
    return Bp


def lstm_attention_kernel(ids_ref,      # (T*Bp,)      i32  SMEM time-major token ids
                          emb_hbm,      # (V, Ep)      f32  HBM embedding table
                          wih_ref,      # (Ep, 4*Hp)   cdt  gate-block-padded W_ih.T
                          whh_ref,      # (Hp, 4*Hp)   cdt  gate-block-padded W_hh.T
                          b_ref,        # (1, 4*Hp)    f32  b_ih + b_hh
                          wlab_ref,     # (Hp, Cp)     cdt  W_label.T
                          blab_ref,     # (1, Cp)      f32
                          logits_ref,   # (Bp, Cp)     f32  output (lane-dense tile)
                          emb_ref,      # (T*Bp, Ep)   f32  VMEM: gathered embeddings
                          xw_ref,       # (T*Bp, 4*Hp) cdt  VMEM: hoisted x@W_ih + b
                          rnn_ref,      # (T*Bp, Hp)   cdt  VMEM: LSTM outputs
                          gather_sem,   #                   shared DMA semaphore
                          *, T, Bp, sub_b, unroll):
    TB, Ep = emb_ref.shape
    Hp = rnn_ref.shape[-1]
    nt = Bp // sub_b
    cdtype = wih_ref.dtype                 # MXU-operand / big-scratch dtype

    # ---- 0. embedding gather: one row DMA per (t, b) token, ids read from
    #         SMEM.  Start all copies on a shared semaphore, then drain.
    #         (At production T*B, chunk this and overlap with section 1.)
    def _start(r, carry):
        pltpu.make_async_copy(emb_hbm.at[pl.ds(ids_ref[r], 1)],
                              emb_ref.at[pl.ds(r, 1)],
                              gather_sem).start()
        return carry

    lax.fori_loop(0, TB, _start, 0)

    def _drain(r, carry):
        # Same-shaped descriptor => same wait amount; total waited == started.
        pltpu.make_async_copy(emb_hbm.at[pl.ds(0, 1)],
                              emb_ref.at[pl.ds(0, 1)],
                              gather_sem).wait()
        return carry

    lax.fori_loop(0, TB, _drain, 0)

    # ---- 1. hoisted input projection: ONE big MXU matmul for all timesteps.
    xw_ref[...] = (jnp.dot(emb_ref[...].astype(cdtype), wih_ref[...],
                           preferred_element_type=jnp.float32)
                   + b_ref[...]).astype(xw_ref.dtype)

    # ---- 2. recurrence: only h @ W_hh stays on the serial critical path.
    whh = whh_ref[...]                     # loop-invariant load, hoisted

    def step(t, carry):
        hs, cs = carry                     # tuples of nt f32 (sub_b, Hp) tiles
        base = pl.multiple_of(t * Bp, Bp)
        new_hs, new_cs = [], []
        for k in range(nt):                # independent sub-tiles -> LLO overlap
            h, c = hs[k], cs[k]
            row = pl.multiple_of(base + k * sub_b, sub_b)
            gates = (xw_ref[pl.ds(row, sub_b), :].astype(jnp.float32)
                     + jnp.dot(h.astype(cdtype), whh,
                               preferred_element_type=jnp.float32))
            # PyTorch gate order i, f, g, o; each slice lane-aligned (Hp%128==0)
            i_g = jax.nn.sigmoid(gates[:, 0 * Hp:1 * Hp])
            f_g = jax.nn.sigmoid(gates[:, 1 * Hp:2 * Hp])
            g_g = jnp.tanh(gates[:, 2 * Hp:3 * Hp])
            o_g = jax.nn.sigmoid(gates[:, 3 * Hp:4 * Hp])
            c_new = f_g * c + i_g * g_g
            h_new = o_g * jnp.tanh(c_new)
            rnn_ref[pl.ds(row, sub_b), :] = h_new.astype(rnn_ref.dtype)
            new_hs.append(h_new)
            new_cs.append(c_new)
        return tuple(new_hs), tuple(new_cs)

    h0 = tuple(jnp.zeros((sub_b, Hp), jnp.float32) for _ in range(nt))
    c0 = tuple(jnp.zeros((sub_b, Hp), jnp.float32) for _ in range(nt))
    hs_n, _cs_n = lax.fori_loop(0, T, step, (h0, c0), unroll=unroll)
    h_n = hs_n[0] if nt == 1 else jnp.concatenate(hs_n, axis=0)   # (Bp, Hp) f32

    # ---- 3. attention over time against the final hidden state.
    # TODO(synk): at production T, stream this in chunks (online accumulation)
    # instead of loading the whole (T*Bp, Hp) slab at once.
    rnn_out = rnn_ref[...].astype(jnp.float32).reshape(T, Bp, Hp)
    scores = jnp.sum(rnn_out * h_n[None, :, :], axis=-1)          # (T, Bp)
    scores = scores.T                                             # (Bp, T) lane-dense
    scores = scores - jnp.max(scores, axis=-1, keepdims=True)
    p = jnp.exp(scores)
    denom = jnp.sum(p, axis=-1, keepdims=True)                    # (Bp, 1)
    inv = pl.reciprocal(denom, approx=True)                       # EUP slot
    inv = inv * (2.0 - denom * inv)                               # Newton refine
    attn = p * inv                                                # (Bp, T)
    context = jnp.sum(rnn_out * attn.T[:, :, None], axis=0)       # (Bp, Hp) f32

    # ---- 4. classifier (lane-dense (Bp, Cp) output tile).
    logits_ref[...] = (jnp.dot(context.astype(cdtype), wlab_ref[...],
                               preferred_element_type=jnp.float32)
                       + blab_ref[...])


def lstm_attention_forward(X, params, *, compute_dtype=jnp.bfloat16):
    """X: int32 token ids (B, T). Returns f32 logits (B, class_num).

    compute_dtype: dtype of the MXU operands and of the large VMEM scratches.
    Gate math, the h/c carry, the softmax and all accumulations stay f32.
    """
    emb_table = params["embedding"]             # (V, E)
    W_ih = params["W_ih"]                       # (4H, E)  PyTorch layout
    W_hh = params["W_hh"]                       # (4H, H)
    b_total = params["b_ih"] + params["b_hh"]   # (4H,)
    W_lab = params["W_label"]                   # (C, H)
    b_lab = params["b_label"]                   # (C,)

    B, T = X.shape
    V, E = emb_table.shape
    H = W_hh.shape[1]
    C = W_lab.shape[0]

    Bp = _round_up(B, 8)       # sublane height
    Ep = _round_up(E, 128)     # lane width
    Hp = _round_up(H, 128)
    Cp = _round_up(C, 128)
    TB = T * Bp

    sub_b = _pick_sub_batch(Bp)
    unroll = T if T <= 16 else 8            # full unroll only for short seqs

    # Token ids, time-major, flattened so row r = t*Bp + b; padded batch rows
    # use id 0 (their outputs are sliced off, wasted gather is harmless).
    ids = jnp.pad(jnp.transpose(X.astype(jnp.int32)), ((0, 0), (0, Bp - B)))
    ids = ids.reshape(TB)

    # Embedding table stays f32 in HBM; rows are DMA-gathered inside the kernel.
    emb_pad = jnp.pad(emb_table.astype(jnp.float32), ((0, 0), (0, Ep - E)))

    # Per-gate zero padding keeps the [i|f|g|o] block structure lane-aligned.
    wih_t = jnp.pad(W_ih.reshape(4, H, E),
                    ((0, 0), (0, Hp - H), (0, Ep - E))).reshape(4 * Hp, Ep).T
    whh_t = jnp.pad(W_hh.reshape(4, H, H),
                    ((0, 0), (0, Hp - H), (0, Hp - H))).reshape(4 * Hp, Hp).T
    b_p = jnp.pad(b_total.reshape(4, H), ((0, 0), (0, Hp - H))).reshape(1, 4 * Hp)
    wlab_t = jnp.pad(W_lab, ((0, Cp - C), (0, Hp - H))).T        # (Hp, Cp)
    blab_p = jnp.pad(b_lab, (0, Cp - C)).reshape(1, Cp)          # (1, Cp)

    wih_t = wih_t.astype(compute_dtype)
    whh_t = whh_t.astype(compute_dtype)
    wlab_t = wlab_t.astype(compute_dtype)
    b_p = b_p.astype(jnp.float32)
    blab_p = blab_p.astype(jnp.float32)

    # VMEM budget: actual residents * 1.3, clamped to physical VMEM - headroom.
    cbytes = jnp.dtype(compute_dtype).itemsize
    vmem_bytes = (4 * TB * Ep                                     # emb scratch (f32)
                  + cbytes * (TB * 4 * Hp + TB * Hp)              # xw + rnn scratches
                  + cbytes * (Ep * 4 * Hp + Hp * 4 * Hp + Hp * Cp)
                  + 4 * (4 * Hp + Cp + Bp * Cp))
    try:
        phys_vmem = int(pltpu.get_tpu_info().vmem_capacity_bytes)
    except Exception:
        phys_vmem = 64 * 1024 * 1024        # v7x floor as conservative fallback
    vmem_limit = max(int(1.3 * vmem_bytes) + (2 << 20), 16 << 20)
    vmem_limit = min(vmem_limit, phys_vmem - (4 << 20))

    kernel = functools.partial(lstm_attention_kernel,
                               T=T, Bp=Bp, sub_b=sub_b, unroll=unroll)

    logits_full = pl.pallas_call(
        kernel,
        out_shape=jax.ShapeDtypeStruct((Bp, Cp), jnp.float32),
        in_specs=[
            pl.BlockSpec(memory_space=pltpu.MemorySpace.SMEM),    # token ids
            pl.BlockSpec(memory_space=pl.ANY),                    # emb table (HBM)
            pl.BlockSpec(memory_space=pltpu.MemorySpace.VMEM),    # W_ih.T
            pl.BlockSpec(memory_space=pltpu.MemorySpace.VMEM),    # W_hh.T
            pl.BlockSpec(memory_space=pltpu.MemorySpace.VMEM),    # bias
            pl.BlockSpec(memory_space=pltpu.MemorySpace.VMEM),    # W_label.T
            pl.BlockSpec(memory_space=pltpu.MemorySpace.VMEM),    # b_label
        ],
        out_specs=pl.BlockSpec(memory_space=pltpu.MemorySpace.VMEM),
        scratch_shapes=[
            pltpu.VMEM((TB, Ep), jnp.float32),        # gathered embeddings
            pltpu.VMEM((TB, 4 * Hp), compute_dtype),  # hoisted x@W_ih + b
            pltpu.VMEM((TB, Hp), compute_dtype),      # LSTM outputs
            pltpu.SemaphoreType.DMA,                  # shared gather semaphore
        ],
        compiler_params=pltpu.CompilerParams(vmem_limit_bytes=vmem_limit),
    )(ids, emb_pad, wih_t, whh_t, b_p, wlab_t, blab_p)

    return logits_full[:B, :C]


def lstm_attention_reference(X, params):
    """Pure-JAX reference of the PyTorch module (for correctness check)."""
    emb = jnp.take(params["embedding"], X, axis=0)            # (B, T, E)
    W_ih, W_hh = params["W_ih"], params["W_hh"]
    b = params["b_ih"] + params["b_hh"]
    H = W_hh.shape[1]
    B = X.shape[0]

    def step(carry, x_t):
        h, c = carry
        gates = x_t @ W_ih.T + h @ W_hh.T + b
        i = jax.nn.sigmoid(gates[:, 0 * H:1 * H])
        f = jax.nn.sigmoid(gates[:, 1 * H:2 * H])
        g = jnp.tanh(gates[:, 2 * H:3 * H])
        o = jax.nn.sigmoid(gates[:, 3 * H:4 * H])
        c = f * c + i * g
        h = o * jnp.tanh(c)
        return (h, c), h

    (h_n, _), hs = lax.scan(step,
                            (jnp.zeros((B, H), jnp.float32),
                             jnp.zeros((B, H), jnp.float32)),
                            jnp.transpose(emb, (1, 0, 2)))
    rnn_out = jnp.transpose(hs, (1, 0, 2))                    # (B, T, H)
    scores = jnp.einsum('bth,bh->bt', rnn_out, h_n)
    attn = jax.nn.softmax(scores, axis=1)
    context = jnp.einsum('bt,bth->bh', attn, rnn_out)
    return context @ params["W_label"].T + params["b_label"]


def init_params(key, vocab_size, embed_dim, hidden_dim, class_num):
    ks = jax.random.split(key, 7)
    scale = 0.1
    return {
        "embedding": scale * jax.random.normal(ks[0], (vocab_size, embed_dim), jnp.float32),
        "W_ih":      scale * jax.random.normal(ks[1], (4 * hidden_dim, embed_dim), jnp.float32),
        "W_hh":      scale * jax.random.normal(ks[2], (4 * hidden_dim, hidden_dim), jnp.float32),
        "b_ih":      scale * jax.random.normal(ks[3], (4 * hidden_dim,), jnp.float32),
        "b_hh":      scale * jax.random.normal(ks[4], (4 * hidden_dim,), jnp.float32),
        "W_label":   scale * jax.random.normal(ks[5], (class_num, hidden_dim), jnp.float32),
        "b_label":   scale * jax.random.normal(ks[6], (class_num,), jnp.float32),
    }


if __name__ == "__main__":
    # args = {'vocab_size': 50, 'embed_dim': 32, 'rnn_dim': 32, 'class_num': 4}
    vocab_size, embed_dim, hidden_dim, class_num = 50, 32, 32, 4
    batch, seq = 2, 8

    key = jax.random.PRNGKey(0)
    k_param, k_x = jax.random.split(key)
    params = init_params(k_param, vocab_size, embed_dim, hidden_dim, class_num)
    X = jax.random.randint(k_x, (batch, seq), 0, vocab_size, dtype=jnp.int32)

    ref = lstm_attention_reference(X, params)

    # 1) f32 path: exact algorithm check against the pure-JAX reference.
    fwd_f32 = jax.jit(functools.partial(lstm_attention_forward,
                                        compute_dtype=jnp.float32))
    logits_f32 = fwd_f32(X, params)
    jax.block_until_ready(logits_f32)
    assert logits_f32.shape == (batch, class_num)
    err_f32 = float(jnp.max(jnp.abs(logits_f32 - ref)))
    assert err_f32 < 1e-3, f"f32 kernel/reference mismatch: max abs err = {err_f32}"

    # 2) default bf16 fast path (bf16 MXU operands + bf16 big scratches,
    #    f32 accumulation / gate math / softmax): looser tolerance for the
    #    expected bf16 rounding drift.
    fwd_bf16 = jax.jit(lstm_attention_forward)
    logits_bf16 = fwd_bf16(X, params)
    jax.block_until_ready(logits_bf16)
    assert logits_bf16.shape == (batch, class_num)
    err_bf16 = float(jnp.max(jnp.abs(logits_bf16 - ref)))
    assert err_bf16 < 3e-2, f"bf16 kernel/reference mismatch: max abs err = {err_bf16}"

    print("KERNEL_OK")
</pallas_src>

<mosaic_0001>
module attributes {stable_mosaic.version = 11 : i64} {
  func.func @lstm_attention_kernel(%arg0: memref<64xi32, #tpu.memory_space<smem>>, %arg1: memref<50x128xf32, #tpu.memory_space<any>>, %arg2: memref<128x512xf32, #tpu.memory_space<vmem>>, %arg3: memref<128x512xf32, #tpu.memory_space<vmem>>, %arg4: memref<1x512xf32, #tpu.memory_space<vmem>>, %arg5: memref<128x128xf32, #tpu.memory_space<vmem>>, %arg6: memref<1x128xf32, #tpu.memory_space<vmem>>, %arg7: memref<8x128xf32, #tpu.memory_space<vmem>>, %arg8: memref<64x128xf32, #tpu.memory_space<vmem>>, %arg9: memref<64x512xf32, #tpu.memory_space<vmem>>, %arg10: memref<64x128xf32, #tpu.memory_space<vmem>>, %arg11: memref<!tpu.dma_semaphore, #tpu.memory_space<semaphore_mem>>) attributes {dimension_semantics = [], scalar_prefetch = 0 : i64, scratch_operands = 4 : i64, tpu.core_type = #tpu.core_type<tc>} {
    %c0_i32 = arith.constant 0 : i32
    %c64_i32 = arith.constant 64 : i32
    %0 = arith.addi %c0_i32, %c64_i32 : i32
    %c1_i32 = arith.constant 1 : i32
    scf.for %arg12 = %c0_i32 to %0 step %c1_i32  : i32 {
      %324 = arith.index_cast %arg12 : i32 to index
      %325 = memref.load %arg0[%324] : memref<64xi32, #tpu.memory_space<smem>>
      %c0_i32_95 = arith.constant 0 : i32
      %326 = tpu.memref_slice %arg1[%325, %c0_i32_95] : memref<50x128xf32, #tpu.memory_space<any>> -> memref<1x128xf32, #tpu.memory_space<any>>
      %c0_i32_96 = arith.constant 0 : i32
      %327 = tpu.memref_slice %arg8[%arg12, %c0_i32_96] : memref<64x128xf32, #tpu.memory_space<vmem>> -> memref<1x128xf32, #tpu.memory_space<vmem>>
      tpu.enqueue_dma source(%326 : memref<1x128xf32, #tpu.memory_space<any>>) target(%327 : memref<1x128xf32, #tpu.memory_space<vmem>>) target_semaphore(%arg11 : memref<!tpu.dma_semaphore, #tpu.memory_space<semaphore_mem>>)
    }
    %c64_i32_0 = arith.constant 64 : i32
    %c0_i32_1 = arith.constant 0 : i32
    %c64_i32_2 = arith.constant 64 : i32
    %1 = arith.addi %c0_i32_1, %c64_i32_2 : i32
    %c1_i32_3 = arith.constant 1 : i32
    scf.for %arg12 = %c0_i32_1 to %1 step %c1_i32_3  : i32 {
      %c0_i32_95 = arith.constant 0 : i32
      %c0_i32_96 = arith.constant 0 : i32
      %324 = tpu.memref_slice %arg1[%c0_i32_95, %c0_i32_96] : memref<50x128xf32, #tpu.memory_space<any>> -> memref<1x128xf32, #tpu.memory_space<any>>
      %c0_i32_97 = arith.constant 0 : i32
      %c0_i32_98 = arith.constant 0 : i32
      %325 = tpu.memref_slice %arg8[%c0_i32_97, %c0_i32_98] : memref<64x128xf32, #tpu.memory_space<vmem>> -> memref<1x128xf32, #tpu.memory_space<vmem>>
      tpu.wait_dma2 semaphore(%arg11 : memref<!tpu.dma_semaphore, #tpu.memory_space<semaphore_mem>>) src(%324 : memref<1x128xf32, #tpu.memory_space<any>>) dst(%325 : memref<1x128xf32, #tpu.memory_space<vmem>>)
    }
    %c0 = arith.constant 0 : index
    %c0_4 = arith.constant 0 : index
    %2 = vector.load %arg8[%c0, %c0_4] : memref<64x128xf32, #tpu.memory_space<vmem>>, vector<64x128xf32>
    %c0_5 = arith.constant 0 : index
    %c0_6 = arith.constant 0 : index
    %3 = vector.load %arg2[%c0_5, %c0_6] : memref<128x512xf32, #tpu.memory_space<vmem>>, vector<128x512xf32>
    %cst = arith.constant dense<0.000000e+00> : vector<64x512xf32>
    %4 = tpu.matmul %2, %3, %cst {dimension_numbers = #tpu.dot_dimension_numbers<[1], [0], [0], [1], [0, 0, 1, 1], [], []>} : vector<64x128xf32>, vector<128x512xf32>, vector<64x512xf32> -> vector<64x512xf32>
    %c0_7 = arith.constant 0 : index
    %c0_8 = arith.constant 0 : index
    %5 = vector.load %arg4[%c0_7, %c0_8] : memref<1x512xf32, #tpu.memory_space<vmem>>, vector<1x512xf32>
    %6 = vector.broadcast %5 : vector<1x512xf32> to vector<64x512xf32>
    %7 = arith.addf %4, %6 : vector<64x512xf32>
    %c0_9 = arith.constant 0 : index
    %c0_10 = arith.constant 0 : index
    %8 = vector.load %arg9[%c0_9, %c0_10] : memref<64x512xf32, #tpu.memory_space<vmem>>, vector<64x512xf32>
    tpu.vector_store %arg9[%c0_9, %c0_10], %7 {strides = array<i32>} : memref<64x512xf32, #tpu.memory_space<vmem>>, vector<64x512xf32>,
    %c0_11 = arith.constant 0 : index
    %c0_12 = arith.constant 0 : index
    %9 = vector.load %arg3[%c0_11, %c0_12] : memref<128x512xf32, #tpu.memory_space<vmem>>, vector<128x512xf32>
    %cst_13 = arith.constant 0.000000e+00 : f32
    %10 = vector.broadcast %cst_13 : f32 to vector<8x128xf32>
    %cst_14 = arith.constant 0.000000e+00 : f32
    %11 = vector.broadcast %cst_14 : f32 to vector<8x128xf32>
    %c0_i32_15 = arith.constant 0 : i32
    %c8_i32 = arith.constant 8 : i32
    %12 = arith.muli %c0_i32_15, %c8_i32 : i32
    %13 = tpu.assume_multiple %12, 8 : i32
    %c0_i32_16 = arith.constant 0 : i32
    %14 = arith.addi %13, %c0_i32_16 : i32
    %15 = tpu.assume_multiple %14, 8 : i32
    %16 = arith.index_cast %15 : i32 to index
    %c0_17 = arith.constant 0 : index
    %17 = vector.load %arg9[%16, %c0_17] : memref<64x512xf32, #tpu.memory_space<vmem>>, vector<8x512xf32>
    %cst_18 = arith.constant dense<0.000000e+00> : vector<8x512xf32>
    %18 = tpu.matmul %10, %9, %cst_18 {dimension_numbers = #tpu.dot_dimension_numbers<[1], [0], [0], [1], [0, 0, 1, 1], [], []>} : vector<8x128xf32>, vector<128x512xf32>, vector<8x512xf32> -> vector<8x512xf32>
    %19 = arith.addf %17, %18 : vector<8x512xf32>
    %20 = vector.extract_strided_slice %19 {offsets = [0, 0], sizes = [8, 128], strides = [1, 1]} : vector<8x512xf32> to vector<8x128xf32>
    %21 = arith.negf %20 : vector<8x128xf32>
    %22 = math.exp %21 : vector<8x128xf32>
    %cst_19 = arith.constant 1.000000e+00 : f32
    %23 = vector.broadcast %cst_19 : f32 to vector<8x128xf32>
    %24 = arith.addf %23, %22 : vector<8x128xf32>
    %25 = arith.divf %23, %24 : vector<8x128xf32>
    %26 = vector.extract_strided_slice %19 {offsets = [0, 128], sizes = [8, 128], strides = [1, 1]} : vector<8x512xf32> to vector<8x128xf32>
    %27 = arith.negf %26 : vector<8x128xf32>
    %28 = math.exp %27 : vector<8x128xf32>
    %cst_20 = arith.constant 1.000000e+00 : f32
    %29 = vector.broadcast %cst_20 : f32 to vector<8x128xf32>
    %30 = arith.addf %29, %28 : vector<8x128xf32>
    %31 = arith.divf %29, %30 : vector<8x128xf32>
    %32 = vector.extract_strided_slice %19 {offsets = [0, 256], sizes = [8, 128], strides = [1, 1]} : vector<8x512xf32> to vector<8x128xf32>
    %33 = math.tanh %32 : vector<8x128xf32>
    %34 = vector.extract_strided_slice %19 {offsets = [0, 384], sizes = [8, 128], strides = [1, 1]} : vector<8x512xf32> to vector<8x128xf32>
    %35 = arith.negf %34 : vector<8x128xf32>
    %36 = math.exp %35 : vector<8x128xf32>
    %cst_21 = arith.constant 1.000000e+00 : f32
    %37 = vector.broadcast %cst_21 : f32 to vector<8x128xf32>
    %38 = arith.addf %37, %36 : vector<8x128xf32>
    %39 = arith.divf %37, %38 : vector<8x128xf32>
    %40 = arith.mulf %31, %11 : vector<8x128xf32>
    %41 = arith.mulf %25, %33 : vector<8x128xf32>
    %42 = arith.addf %40, %41 : vector<8x128xf32>
    %43 = math.tanh %42 : vector<8x128xf32>
    %44 = arith.mulf %39, %43 : vector<8x128xf32>
    %45 = arith.index_cast %15 : i32 to index
    %c0_22 = arith.constant 0 : index
    %46 = vector.load %arg10[%45, %c0_22] : memref<64x128xf32, #tpu.memory_space<vmem>>, vector<8x128xf32>
    tpu.vector_store %arg10[%45, %c0_22], %44 {strides = array<i32>} : memref<64x128xf32, #tpu.memory_space<vmem>>, vector<8x128xf32>,
    %c1_i32_23 = arith.constant 1 : i32
    %c8_i32_24 = arith.constant 8 : i32
    %47 = arith.muli %c1_i32_23, %c8_i32_24 : i32
    %48 = tpu.assume_multiple %47, 8 : i32
    %c0_i32_25 = arith.constant 0 : i32
    %49 = arith.addi %48, %c0_i32_25 : i32
    %50 = tpu.assume_multiple %49, 8 : i32
    %51 = arith.index_cast %50 : i32 to index
    %c0_26 = arith.constant 0 : index
    %52 = vector.load %arg9[%51, %c0_26] : memref<64x512xf32, #tpu.memory_space<vmem>>, vector<8x512xf32>
    %cst_27 = arith.constant dense<0.000000e+00> : vector<8x512xf32>
    %53 = tpu.matmul %44, %9, %cst_27 {dimension_numbers = #tpu.dot_dimension_numbers<[1], [0], [0], [1], [0, 0, 1, 1], [], []>} : vector<8x128xf32>, vector<128x512xf32>, vector<8x512xf32> -> vector<8x512xf32>
    %54 = arith.addf %52, %53 : vector<8x512xf32>
    %55 = vector.extract_strided_slice %54 {offsets = [0, 0], sizes = [8, 128], strides = [1, 1]} : vector<8x512xf32> to vector<8x128xf32>
    %56 = arith.negf %55 : vector<8x128xf32>
    %57 = math.exp %56 : vector<8x128xf32>
    %cst_28 = arith.constant 1.000000e+00 : f32
    %58 = vector.broadcast %cst_28 : f32 to vector<8x128xf32>
    %59 = arith.addf %58, %57 : vector<8x128xf32>
    %60 = arith.divf %58, %59 : vector<8x128xf32>
    %61 = vector.extract_strided_slice %54 {offsets = [0, 128], sizes = [8, 128], strides = [1, 1]} : vector<8x512xf32> to vector<8x128xf32>
    %62 = arith.negf %61 : vector<8x128xf32>
    %63 = math.exp %62 : vector<8x128xf32>
    %cst_29 = arith.constant 1.000000e+00 : f32
    %64 = vector.broadcast %cst_29 : f32 to vector<8x128xf32>
    %65 = arith.addf %64, %63 : vector<8x128xf32>
    %66 = arith.divf %64, %65 : vector<8x128xf32>
    %67 = vector.extract_strided_slice %54 {offsets = [0, 256], sizes = [8, 128], strides = [1, 1]} : vector<8x512xf32> to vector<8x128xf32>
    %68 = math.tanh %67 : vector<8x128xf32>
    %69 = vector.extract_strided_slice %54 {offsets = [0, 384], sizes = [8, 128], strides = [1, 1]} : vector<8x512xf32> to vector<8x128xf32>
    %70 = arith.negf %69 : vector<8x128xf32>
    %71 = math.exp %70 : vector<8x128xf32>
    %cst_30 = arith.constant 1.000000e+00 : f32
    %72 = vector.broadcast %cst_30 : f32 to vector<8x128xf32>
    %73 = arith.addf %72, %71 : vector<8x128xf32>
    %74 = arith.divf %72, %73 : vector<8x128xf32>
    %75 = arith.mulf %66, %42 : vector<8x128xf32>
    %76 = arith.mulf %60, %68 : vector<8x128xf32>
    %77 = arith.addf %75, %76 : vector<8x128xf32>
    %78 = math.tanh %77 : vector<8x128xf32>
    %79 = arith.mulf %74, %78 : vector<8x128xf32>
    %80 = arith.index_cast %50 : i32 to index
    %c0_31 = arith.constant 0 : index
    %81 = vector.load %arg10[%80, %c0_31] : memref<64x128xf32, #tpu.memory_space<vmem>>, vector<8x128xf32>
    tpu.vector_store %arg10[%80, %c0_31], %79 {strides = array<i32>} : memref<64x128xf32, #tpu.memory_space<vmem>>, vector<8x128xf32>,
    %c2_i32 = arith.constant 2 : i32
    %c8_i32_32 = arith.constant 8 : i32
    %82 = arith.muli %c2_i32, %c8_i32_32 : i32
    %83 = tpu.assume_multiple %82, 8 : i32
    %c0_i32_33 = arith.constant 0 : i32
    %84 = arith.addi %83, %c0_i32_33 : i32
    %85 = tpu.assume_multiple %84, 8 : i32
    %86 = arith.index_cast %85 : i32 to index
    %c0_34 = arith.constant 0 : index
    %87 = vector.load %arg9[%86, %c0_34] : memref<64x512xf32, #tpu.memory_space<vmem>>, vector<8x512xf32>
    %cst_35 = arith.constant dense<0.000000e+00> : vector<8x512xf32>
    %88 = tpu.matmul %79, %9, %cst_35 {dimension_numbers = #tpu.dot_dimension_numbers<[1], [0], [0], [1], [0, 0, 1, 1], [], []>} : vector<8x128xf32>, vector<128x512xf32>, vector<8x512xf32> -> vector<8x512xf32>
    %89 = arith.addf %87, %88 : vector<8x512xf32>
    %90 = vector.extract_strided_slice %89 {offsets = [0, 0], sizes = [8, 128], strides = [1, 1]} : vector<8x512xf32> to vector<8x128xf32>
    %91 = arith.negf %90 : vector<8x128xf32>
    %92 = math.exp %91 : vector<8x128xf32>
    %cst_36 = arith.constant 1.000000e+00 : f32
    %93 = vector.broadcast %cst_36 : f32 to vector<8x128xf32>
    %94 = arith.addf %93, %92 : vector<8x128xf32>
    %95 = arith.divf %93, %94 : vector<8x128xf32>
    %96 = vector.extract_strided_slice %89 {offsets = [0, 128], sizes = [8, 128], strides = [1, 1]} : vector<8x512xf32> to vector<8x128xf32>
    %97 = arith.negf %96 : vector<8x128xf32>
    %98 = math.exp %97 : vector<8x128xf32>
    %cst_37 = arith.constant 1.000000e+00 : f32
    %99 = vector.broadcast %cst_37 : f32 to vector<8x128xf32>
    %100 = arith.addf %99, %98 : vector<8x128xf32>
    %101 = arith.divf %99, %100 : vector<8x128xf32>
    %102 = vector.extract_strided_slice %89 {offsets = [0, 256], sizes = [8, 128], strides = [1, 1]} : vector<8x512xf32> to vector<8x128xf32>
    %103 = math.tanh %102 : vector<8x128xf32>
    %104 = vector.extract_strided_slice %89 {offsets = [0, 384], sizes = [8, 128], strides = [1, 1]} : vector<8x512xf32> to vector<8x128xf32>
    %105 = arith.negf %104 : vector<8x128xf32>
    %106 = math.exp %105 : vector<8x128xf32>
    %cst_38 = arith.constant 1.000000e+00 : f32
    %107 = vector.broadcast %cst_38 : f32 to vector<8x128xf32>
    %108 = arith.addf %107, %106 : vector<8x128xf32>
    %109 = arith.divf %107, %108 : vector<8x128xf32>
    %110 = arith.mulf %101, %77 : vector<8x128xf32>
    %111 = arith.mulf %95, %103 : vector<8x128xf32>
    %112 = arith.addf %110, %111 : vector<8x128xf32>
    %113 = math.tanh %112 : vector<8x128xf32>
    %114 = arith.mulf %109, %113 : vector<8x128xf32>
    %115 = arith.index_cast %85 : i32 to index
    %c0_39 = arith.constant 0 : index
    %116 = vector.load %arg10[%115, %c0_39] : memref<64x128xf32, #tpu.memory_space<vmem>>, vector<8x128xf32>
    tpu.vector_store %arg10[%115, %c0_39], %114 {strides = array<i32>} : memref<64x128xf32, #tpu.memory_space<vmem>>, vector<8x128xf32>,
    %c3_i32 = arith.constant 3 : i32
    %c8_i32_40 = arith.constant 8 : i32
    %117 = arith.muli %c3_i32, %c8_i32_40 : i32
    %118 = tpu.assume_multiple %117, 8 : i32
    %c0_i32_41 = arith.constant 0 : i32
    %119 = arith.addi %118, %c0_i32_41 : i32
    %120 = tpu.assume_multiple %119, 8 : i32
    %121 = arith.index_cast %120 : i32 to index
    %c0_42 = arith.constant 0 : index
    %122 = vector.load %arg9[%121, %c0_42] : memref<64x512xf32, #tpu.memory_space<vmem>>, vector<8x512xf32>
    %cst_43 = arith.constant dense<0.000000e+00> : vector<8x512xf32>
    %123 = tpu.matmul %114, %9, %cst_43 {dimension_numbers = #tpu.dot_dimension_numbers<[1], [0], [0], [1], [0, 0, 1, 1], [], []>} : vector<8x128xf32>, vector<128x512xf32>, vector<8x512xf32> -> vector<8x512xf32>
    %124 = arith.addf %122, %123 : vector<8x512xf32>
    %125 = vector.extract_strided_slice %124 {offsets = [0, 0], sizes = [8, 128], strides = [1, 1]} : vector<8x512xf32> to vector<8x128xf32>
    %126 = arith.negf %125 : vector<8x128xf32>
    %127 = math.exp %126 : vector<8x128xf32>
    %cst_44 = arith.constant 1.000000e+00 : f32
    %128 = vector.broadcast %cst_44 : f32 to vector<8x128xf32>
    %129 = arith.addf %128, %127 : vector<8x128xf32>
    %130 = arith.divf %128, %129 : vector<8x128xf32>
    %131 = vector.extract_strided_slice %124 {offsets = [0, 128], sizes = [8, 128], strides = [1, 1]} : vector<8x512xf32> to vector<8x128xf32>
    %132 = arith.negf %131 : vector<8x128xf32>
    %133 = math.exp %132 : vector<8x128xf32>
    %cst_45 = arith.constant 1.000000e+00 : f32
    %134 = vector.broadcast %cst_45 : f32 to vector<8x128xf32>
    %135 = arith.addf %134, %133 : vector<8x128xf32>
    %136 = arith.divf %134, %135 : vector<8x128xf32>
    %137 = vector.extract_strided_slice %124 {offsets = [0, 256], sizes = [8, 128], strides = [1, 1]} : vector<8x512xf32> to vector<8x128xf32>
    %138 = math.tanh %137 : vector<8x128xf32>
    %139 = vector.extract_strided_slice %124 {offsets = [0, 384], sizes = [8, 128], strides = [1, 1]} : vector<8x512xf32> to vector<8x128xf32>
    %140 = arith.negf %139 : vector<8x128xf32>
    %141 = math.exp %140 : vector<8x128xf32>
    %cst_46 = arith.constant 1.000000e+00 : f32
    %142 = vector.broadcast %cst_46 : f32 to vector<8x128xf32>
    %143 = arith.addf %142, %141 : vector<8x128xf32>
    %144 = arith.divf %142, %143 : vector<8x128xf32>
    %145 = arith.mulf %136, %112 : vector<8x128xf32>
    %146 = arith.mulf %130, %138 : vector<8x128xf32>
    %147 = arith.addf %145, %146 : vector<8x128xf32>
    %148 = math.tanh %147 : vector<8x128xf32>
    %149 = arith.mulf %144, %148 : vector<8x128xf32>
    %150 = arith.index_cast %120 : i32 to index
    %c0_47 = arith.constant 0 : index
    %151 = vector.load %arg10[%150, %c0_47] : memref<64x128xf32, #tpu.memory_space<vmem>>, vector<8x128xf32>
    tpu.vector_store %arg10[%150, %c0_47], %149 {strides = array<i32>} : memref<64x128xf32, #tpu.memory_space<vmem>>, vector<8x128xf32>,
    %c4_i32 = arith.constant 4 : i32
    %c8_i32_48 = arith.constant 8 : i32
    %152 = arith.muli %c4_i32, %c8_i32_48 : i32
    %153 = tpu.assume_multiple %152, 8 : i32
    %c0_i32_49 = arith.constant 0 : i32
    %154 = arith.addi %153, %c0_i32_49 : i32
    %155 = tpu.assume_multiple %154, 8 : i32
    %156 = arith.index_cast %155 : i32 to index
    %c0_50 = arith.constant 0 : index
    %157 = vector.load %arg9[%156, %c0_50] : memref<64x512xf32, #tpu.memory_space<vmem>>, vector<8x512xf32>
    %cst_51 = arith.constant dense<0.000000e+00> : vector<8x512xf32>
    %158 = tpu.matmul %149, %9, %cst_51 {dimension_numbers = #tpu.dot_dimension_numbers<[1], [0], [0], [1], [0, 0, 1, 1], [], []>} : vector<8x128xf32>, vector<128x512xf32>, vector<8x512xf32> -> vector<8x512xf32>
    %159 = arith.addf %157, %158 : vector<8x512xf32>
    %160 = vector.extract_strided_slice %159 {offsets = [0, 0], sizes = [8, 128], strides = [1, 1]} : vector<8x512xf32> to vector<8x128xf32>
    %161 = arith.negf %160 : vector<8x128xf32>
    %162 = math.exp %161 : vector<8x128xf32>
    %cst_52 = arith.constant 1.000000e+00 : f32
    %163 = vector.broadcast %cst_52 : f32 to vector<8x128xf32>
    %164 = arith.addf %163, %162 : vector<8x128xf32>
    %165 = arith.divf %163, %164 : vector<8x128xf32>
    %166 = vector.extract_strided_slice %159 {offsets = [0, 128], sizes = [8, 128], strides = [1, 1]} : vector<8x512xf32> to vector<8x128xf32>
    %167 = arith.negf %166 : vector<8x128xf32>
    %168 = math.exp %167 : vector<8x128xf32>
    %cst_53 = arith.constant 1.000000e+00 : f32
    %169 = vector.broadcast %cst_53 : f32 to vector<8x128xf32>
    %170 = arith.addf %169, %168 : vector<8x128xf32>
    %171 = arith.divf %169, %170 : vector<8x128xf32>
    %172 = vector.extract_strided_slice %159 {offsets = [0, 256], sizes = [8, 128], strides = [1, 1]} : vector<8x512xf32> to vector<8x128xf32>
    %173 = math.tanh %172 : vector<8x128xf32>
    %174 = vector.extract_strided_slice %159 {offsets = [0, 384], sizes = [8, 128], strides = [1, 1]} : vector<8x512xf32> to vector<8x128xf32>
    %175 = arith.negf %174 : vector<8x128xf32>
    %176 = math.exp %175 : vector<8x128xf32>
    %cst_54 = arith.constant 1.000000e+00 : f32
    %177 = vector.broadcast %cst_54 : f32 to vector<8x128xf32>
    %178 = arith.addf %177, %176 : vector<8x128xf32>
    %179 = arith.divf %177, %178 : vector<8x128xf32>
    %180 = arith.mulf %171, %147 : vector<8x128xf32>
    %181 = arith.mulf %165, %173 : vector<8x128xf32>
    %182 = arith.addf %180, %181 : vector<8x128xf32>
    %183 = math.tanh %182 : vector<8x128xf32>
    %184 = arith.mulf %179, %183 : vector<8x128xf32>
    %185 = arith.index_cast %155 : i32 to index
    %c0_55 = arith.constant 0 : index
    %186 = vector.load %arg10[%185, %c0_55] : memref<64x128xf32, #tpu.memory_space<vmem>>, vector<8x128xf32>
    tpu.vector_store %arg10[%185, %c0_55], %184 {strides = array<i32>} : memref<64x128xf32, #tpu.memory_space<vmem>>, vector<8x128xf32>,
    %c5_i32 = arith.constant 5 : i32
    %c8_i32_56 = arith.constant 8 : i32
    %187 = arith.muli %c5_i32, %c8_i32_56 : i32
    %188 = tpu.assume_multiple %187, 8 : i32
    %c0_i32_57 = arith.constant 0 : i32
    %189 = arith.addi %188, %c0_i32_57 : i32
    %190 = tpu.assume_multiple %189, 8 : i32
    %191 = arith.index_cast %190 : i32 to index
    %c0_58 = arith.constant 0 : index
    %192 = vector.load %arg9[%191, %c0_58] : memref<64x512xf32, #tpu.memory_space<vmem>>, vector<8x512xf32>
    %cst_59 = arith.constant dense<0.000000e+00> : vector<8x512xf32>
    %193 = tpu.matmul %184, %9, %cst_59 {dimension_numbers = #tpu.dot_dimension_numbers<[1], [0], [0], [1], [0, 0, 1, 1], [], []>} : vector<8x128xf32>, vector<128x512xf32>, vector<8x512xf32> -> vector<8x512xf32>
    %194 = arith.addf %192, %193 : vector<8x512xf32>
    %195 = vector.extract_strided_slice %194 {offsets = [0, 0], sizes = [8, 128], strides = [1, 1]} : vector<8x512xf32> to vector<8x128xf32>
    %196 = arith.negf %195 : vector<8x128xf32>
    %197 = math.exp %196 : vector<8x128xf32>
    %cst_60 = arith.constant 1.000000e+00 : f32
    %198 = vector.broadcast %cst_60 : f32 to vector<8x128xf32>
    %199 = arith.addf %198, %197 : vector<8x128xf32>
    %200 = arith.divf %198, %199 : vector<8x128xf32>
    %201 = vector.extract_strided_slice %194 {offsets = [0, 128], sizes = [8, 128], strides = [1, 1]} : vector<8x512xf32> to vector<8x128xf32>
    %202 = arith.negf %201 : vector<8x128xf32>
    %203 = math.exp %202 : vector<8x128xf32>
    %cst_61 = arith.constant 1.000000e+00 : f32
    %204 = vector.broadcast %cst_61 : f32 to vector<8x128xf32>
    %205 = arith.addf %204, %203 : vector<8x128xf32>
    %206 = arith.divf %204, %205 : vector<8x128xf32>
    %207 = vector.extract_strided_slice %194 {offsets = [0, 256], sizes = [8, 128], strides = [1, 1]} : vector<8x512xf32> to vector<8x128xf32>
    %208 = math.tanh %207 : vector<8x128xf32>
    %209 = vector.extract_strided_slice %194 {offsets = [0, 384], sizes = [8, 128], strides = [1, 1]} : vector<8x512xf32> to vector<8x128xf32>
    %210 = arith.negf %209 : vector<8x128xf32>
    %211 = math.exp %210 : vector<8x128xf32>
    %cst_62 = arith.constant 1.000000e+00 : f32
    %212 = vector.broadcast %cst_62 : f32 to vector<8x128xf32>
    %213 = arith.addf %212, %211 : vector<8x128xf32>
    %214 = arith.divf %212, %213 : vector<8x128xf32>
    %215 = arith.mulf %206, %182 : vector<8x128xf32>
    %216 = arith.mulf %200, %208 : vector<8x128xf32>
    %217 = arith.addf %215, %216 : vector<8x128xf32>
    %218 = math.tanh %217 : vector<8x128xf32>
    %219 = arith.mulf %214, %218 : vector<8x128xf32>
    %220 = arith.index_cast %190 : i32 to index
    %c0_63 = arith.constant 0 : index
    %221 = vector.load %arg10[%220, %c0_63] : memref<64x128xf32, #tpu.memory_space<vmem>>, vector<8x128xf32>
    tpu.vector_store %arg10[%220, %c0_63], %219 {strides = array<i32>} : memref<64x128xf32, #tpu.memory_space<vmem>>, vector<8x128xf32>,
    %c6_i32 = arith.constant 6 : i32
    %c8_i32_64 = arith.constant 8 : i32
    %222 = arith.muli %c6_i32, %c8_i32_64 : i32
    %223 = tpu.assume_multiple %222, 8 : i32
    %c0_i32_65 = arith.constant 0 : i32
    %224 = arith.addi %223, %c0_i32_65 : i32
    %225 = tpu.assume_multiple %224, 8 : i32
    %226 = arith.index_cast %225 : i32 to index
    %c0_66 = arith.constant 0 : index
    %227 = vector.load %arg9[%226, %c0_66] : memref<64x512xf32, #tpu.memory_space<vmem>>, vector<8x512xf32>
    %cst_67 = arith.constant dense<0.000000e+00> : vector<8x512xf32>
    %228 = tpu.matmul %219, %9, %cst_67 {dimension_numbers = #tpu.dot_dimension_numbers<[1], [0], [0], [1], [0, 0, 1, 1], [], []>} : vector<8x128xf32>, vector<128x512xf32>, vector<8x512xf32> -> vector<8x512xf32>
    %229 = arith.addf %227, %228 : vector<8x512xf32>
    %230 = vector.extract_strided_slice %229 {offsets = [0, 0], sizes = [8, 128], strides = [1, 1]} : vector<8x512xf32> to vector<8x128xf32>
    %231 = arith.negf %230 : vector<8x128xf32>
    %232 = math.exp %231 : vector<8x128xf32>
    %cst_68 = arith.constant 1.000000e+00 : f32
    %233 = vector.broadcast %cst_68 : f32 to vector<8x128xf32>
    %234 = arith.addf %233, %232 : vector<8x128xf32>
    %235 = arith.divf %233, %234 : vector<8x128xf32>
    %236 = vector.extract_strided_slice %229 {offsets = [0, 128], sizes = [8, 128], strides = [1, 1]} : vector<8x512xf32> to vector<8x128xf32>
    %237 = arith.negf %236 : vector<8x128xf32>
    %238 = math.exp %237 : vector<8x128xf32>
    %cst_69 = arith.constant 1.000000e+00 : f32
    %239 = vector.broadcast %cst_69 : f32 to vector<8x128xf32>
    %240 = arith.addf %239, %238 : vector<8x128xf32>
    %241 = arith.divf %239, %240 : vector<8x128xf32>
    %242 = vector.extract_strided_slice %229 {offsets = [0, 256], sizes = [8, 128], strides = [1, 1]} : vector<8x512xf32> to vector<8x128xf32>
    %243 = math.tanh %242 : vector<8x128xf32>
    %244 = vector.extract_strided_slice %229 {offsets = [0, 384], sizes = [8, 128], strides = [1, 1]} : vector<8x512xf32> to vector<8x128xf32>
    %245 = arith.negf %244 : vector<8x128xf32>
    %246 = math.exp %245 : vector<8x128xf32>
    %cst_70 = arith.constant 1.000000e+00 : f32
    %247 = vector.broadcast %cst_70 : f32 to vector<8x128xf32>
    %248 = arith.addf %247, %246 : vector<8x128xf32>
    %249 = arith.divf %247, %248 : vector<8x128xf32>
    %250 = arith.mulf %241, %217 : vector<8x128xf32>
    %251 = arith.mulf %235, %243 : vector<8x128xf32>
    %252 = arith.addf %250, %251 : vector<8x128xf32>
    %253 = math.tanh %252 : vector<8x128xf32>
    %254 = arith.mulf %249, %253 : vector<8x128xf32>
    %255 = arith.index_cast %225 : i32 to index
    %c0_71 = arith.constant 0 : index
    %256 = vector.load %arg10[%255, %c0_71] : memref<64x128xf32, #tpu.memory_space<vmem>>, vector<8x128xf32>
    tpu.vector_store %arg10[%255, %c0_71], %254 {strides = array<i32>} : memref<64x128xf32, #tpu.memory_space<vmem>>, vector<8x128xf32>,
    %c7_i32 = arith.constant 7 : i32
    %c8_i32_72 = arith.constant 8 : i32
    %257 = arith.muli %c7_i32, %c8_i32_72 : i32
    %258 = tpu.assume_multiple %257, 8 : i32
    %c0_i32_73 = arith.constant 0 : i32
    %259 = arith.addi %258, %c0_i32_73 : i32
    %260 = tpu.assume_multiple %259, 8 : i32
    %261 = arith.index_cast %260 : i32 to index
    %c0_74 = arith.constant 0 : index
    %262 = vector.load %arg9[%261, %c0_74] : memref<64x512xf32, #tpu.memory_space<vmem>>, vector<8x512xf32>
    %cst_75 = arith.constant dense<0.000000e+00> : vector<8x512xf32>
    %263 = tpu.matmul %254, %9, %cst_75 {dimension_numbers = #tpu.dot_dimension_numbers<[1], [0], [0], [1], [0, 0, 1, 1], [], []>} : vector<8x128xf32>, vector<128x512xf32>, vector<8x512xf32> -> vector<8x512xf32>
    %264 = arith.addf %262, %263 : vector<8x512xf32>
    %265 = vector.extract_strided_slice %264 {offsets = [0, 0], sizes = [8, 128], strides = [1, 1]} : vector<8x512xf32> to vector<8x128xf32>
    %266 = arith.negf %265 : vector<8x128xf32>
    %267 = math.exp %266 : vector<8x128xf32>
    %cst_76 = arith.constant 1.000000e+00 : f32
    %268 = vector.broadcast %cst_76 : f32 to vector<8x128xf32>
    %269 = arith.addf %268, %267 : vector<8x128xf32>
    %270 = arith.divf %268, %269 : vector<8x128xf32>
    %271 = vector.extract_strided_slice %264 {offsets = [0, 128], sizes = [8, 128], strides = [1, 1]} : vector<8x512xf32> to vector<8x128xf32>
    %272 = arith.negf %271 : vector<8x128xf32>
    %273 = math.exp %272 : vector<8x128xf32>
    %cst_77 = arith.constant 1.000000e+00 : f32
    %274 = vector.broadcast %cst_77 : f32 to vector<8x128xf32>
    %275 = arith.addf %274, %273 : vector<8x128xf32>
    %276 = arith.divf %274, %275 : vector<8x128xf32>
    %277 = vector.extract_strided_slice %264 {offsets = [0, 256], sizes = [8, 128], strides = [1, 1]} : vector<8x512xf32> to vector<8x128xf32>
    %278 = math.tanh %277 : vector<8x128xf32>
    %279 = vector.extract_strided_slice %264 {offsets = [0, 384], sizes = [8, 128], strides = [1, 1]} : vector<8x512xf32> to vector<8x128xf32>
    %280 = arith.negf %279 : vector<8x128xf32>
    %281 = math.exp %280 : vector<8x128xf32>
    %cst_78 = arith.constant 1.000000e+00 : f32
    %282 = vector.broadcast %cst_78 : f32 to vector<8x128xf32>
    %283 = arith.addf %282, %281 : vector<8x128xf32>
    %284 = arith.divf %282, %283 : vector<8x128xf32>
    %285 = arith.mulf %276, %252 : vector<8x128xf32>
    %286 = arith.mulf %270, %278 : vector<8x128xf32>
    %287 = arith.addf %285, %286 : vector<8x128xf32>
    %288 = math.tanh %287 : vector<8x128xf32>
    %289 = arith.mulf %284, %288 : vector<8x128xf32>
    %290 = arith.index_cast %260 : i32 to index
    %c0_79 = arith.constant 0 : index
    %291 = vector.load %arg10[%290, %c0_79] : memref<64x128xf32, #tpu.memory_space<vmem>>, vector<8x128xf32>
    tpu.vector_store %arg10[%290, %c0_79], %289 {strides = array<i32>} : memref<64x128xf32, #tpu.memory_space<vmem>>, vector<8x128xf32>,
    %c8_i32_80 = arith.constant 8 : i32
    %c0_81 = arith.constant 0 : index
    %c0_82 = arith.constant 0 : index
    %292 = vector.load %arg10[%c0_81, %c0_82] : memref<64x128xf32, #tpu.memory_space<vmem>>, vector<64x128xf32>
    %293 = vector.shape_cast %292 : vector<64x128xf32> to vector<8x8x128xf32>
    %294 = vector.shape_cast %289 : vector<8x128xf32> to vector<1x8x128xf32>
    %295 = vector.broadcast %294 : vector<1x8x128xf32> to vector<8x8x128xf32>
    %296 = arith.mulf %293, %295 : vector<8x8x128xf32>
    %cst_83 = arith.constant dense<0.000000e+00> : vector<8x8xf32>
    %297 = vector.multi_reduction <add>, %296, %cst_83 [2] : vector<8x8x128xf32> to vector<8x8xf32>
    %298 = tpu.transpose %297, [1, 0] : vector<8x8xf32> -> vector<8x8xf32>
    %cst_84 = arith.constant dense<0xFF800000> : vector<8xf32>
    %299 = vector.multi_reduction <maximumf>, %298, %cst_84 [1] : vector<8x8xf32> to vector<8xf32>
    %300 = vector.shape_cast %299 : vector<8xf32> to vector<8x1xf32>
    %301 = vector.broadcast %300 : vector<8x1xf32> to vector<8x8xf32>
    %302 = arith.subf %298, %301 : vector<8x8xf32>
    %303 = math.exp %302 : vector<8x8xf32>
    %cst_85 = arith.constant dense<0.000000e+00> : vector<8xf32>
    %304 = vector.multi_reduction <add>, %303, %cst_85 [1] : vector<8x8xf32> to vector<8xf32>
    %305 = vector.shape_cast %304 : vector<8xf32> to vector<8x1xf32>
    %306 = tpu.reciprocal %305 {approx = true} : vector<8x1xf32> -> vector<8x1xf32>
    %307 = arith.mulf %305, %306 : vector<8x1xf32>
    %cst_86 = arith.constant 2.000000e+00 : f32
    %308 = vector.broadcast %cst_86 : f32 to vector<8x1xf32>
    %309 = arith.subf %308, %307 : vector<8x1xf32>
    %310 = arith.mulf %306, %309 : vector<8x1xf32>
    %311 = vector.broadcast %310 : vector<8x1xf32> to vector<8x8xf32>
    %312 = arith.mulf %303, %311 : vector<8x8xf32>
    %313 = tpu.transpose %312, [1, 0] : vector<8x8xf32> -> vector<8x8xf32>
    %314 = vector.shape_cast %313 : vector<8x8xf32> to vector<8x8x1xf32>
    %315 = vector.broadcast %314 : vector<8x8x1xf32> to vector<8x8x128xf32>
    %316 = arith.mulf %293, %315 : vector<8x8x128xf32>
    %cst_87 = arith.constant dense<0.000000e+00> : vector<8x128xf32>
    %317 = vector.multi_reduction <add>, %316, %cst_87 [0] : vector<8x8x128xf32> to vector<8x128xf32>
    %c0_88 = arith.constant 0 : index
    %c0_89 = arith.constant 0 : index
    %318 = vector.load %arg5[%c0_88, %c0_89] : memref<128x128xf32, #tpu.memory_space<vmem>>, vector<128x128xf32>
    %cst_90 = arith.constant dense<0.000000e+00> : vector<8x128xf32>
    %319 = tpu.matmul %317, %318, %cst_90 {dimension_numbers = #tpu.dot_dimension_numbers<[1], [0], [0], [1], [0, 0, 1, 1], [], []>} : vector<8x128xf32>, vector<128x128xf32>, vector<8x128xf32> -> vector<8x128xf32>
    %c0_91 = arith.constant 0 : index
    %c0_92 = arith.constant 0 : index
    %320 = vector.load %arg6[%c0_91, %c0_92] : memref<1x128xf32, #tpu.memory_space<vmem>>, vector<1x128xf32>
    %321 = vector.broadcast %320 : vector<1x128xf32> to vector<8x128xf32>
    %322 = arith.addf %319, %321 : vector<8x128xf32>
    %c0_93 = arith.constant 0 : index
    %c0_94 = arith.constant 0 : index
    %323 = vector.load %arg7[%c0_93, %c0_94] : memref<8x128xf32, #tpu.memory_space<vmem>>, vector<8x128xf32>
    tpu.vector_store %arg7[%c0_93, %c0_94], %322 {strides = array<i32>} : memref<8x128xf32, #tpu.memory_space<vmem>>, vector<8x128xf32>,
    return
  }
}

</mosaic_0001>

<bundles_post_ra>
// kernel: lstm_attention_forward.1
= control target key start
LH: loop header
LB: loop body
LE: loop exit
PB: predicated region body
PF: predicated region fallthrough
CT: control target
= control target key end

     0   :  { %12 = vsyncpa [#allocation7], 0  ;;  %s4238_s0 = inlined_call_operand.vmem [shape: s32[64], index: 0, kind: input, shape index: {}]   ;;  %s4239_s1 = inlined_call_operand.vmem [shape: f32[50,128], index: 1, kind: input, shape index: {}]   ;;  %s4240_s2 = inlined_call_operand.vmem [shape: f32[128,512], index: 2, kind: input, shape index: {}]   ;;  %s4241_s3 = inlined_call_operand.vmem [shape: f32[128,512], index: 3, kind: input, shape index: {}]   ;;  %s4242_s4 = inlined_call_operand.vmem [shape: f32[1,512], index: 4, kind: input, shape index: {}]   ;;  %s4243_s5 = inlined_call_operand.vmem [shape: f32[128,128], index: 5, kind: input, shape index: {}]   ;;  %s4244_s6 = inlined_call_operand.vmem [shape: f32[1,128], index: 6, kind: input, shape index: {}]   ;;  %s4245_s7 = inlined_call_operand.vmem [shape: f32[8,128], index: 7, kind: output, shape index: {}]  }
   0x1   :  { %s19_s26 = sshll.u32 %s4238_s0, 4  ;;  %s20_s26 = int_to_ptr.vmem [resolvable:$true] %s19_s26 }
   0x2   :  { %s3213_s27 = scalar_lea.vmem %s20_s26, 16  ;;  %p3218_p1 = scmp.lt.s32.totalorder %s20_s26, %s20_s26 }
   0x3   :  { %p3214_p0 = scmp.ne.s32.totalorder %s20_s26, %s3213_s27  ;;  %p3219_p2 = scmp.lt.s32.totalorder %s3213_s27, %s3213_s27 }
   0x5   :  { %p3220_p3 = por %p3219_p2, %p3218_p1 }
   0x7   :  { %p3221_p4 = pnand %p3220_p3, %p3214_p0 }
   0x9   :  { %3224 = shalt.err (!%p3221_p4)
}
   0xa   :  { %s3245_s28 = smov [#allocation6]  }
   0xb   :  { %22 = dma.vmem_to_smem %s20_s26, 16, %s3245_s28, [#allocation7]  }
   0xc   :  { %3233 = dma.done.wait [#allocation7], 16  }
   0xd   :  { %3234 = vsyncadd [#allocation7], 4294967280 }
   0xe   :  { %36 = sfence }
   0xf   :  { %s3237_s29 = smov 0  }
  0x10 LB: > { %s43_s30 = sld [smem:[#allocation6 + %s3239_s29]]  ;;  %s45_s10 = scalar_lea.vmem [#allocation2], %s3239_s29  ;;  %s3239_s29 = sphi %s3237_s29, %s42_s29  }
  0x16   : > { %s44_s9 = scalar_lea.vmem %s4239_s1, %s43_s30 }
  0x17   : > { %v63_v0 = vld [vmem:[%s44_s9] sm:$0x1] }
  0x18   : > { %64 = vst [vmem:[%s45_s10] sm:$0x1] %v63_v0 }
  0x19   : > { %89 = vsyncadd [#allocation5], 16  ;;  %s42_s29 = sadd.s32 1, %s3239_s29  }
  0x1a   : > { %p39_p5 = scmp.ge.s32.totalorder %s42_s29, 64  }
  0x1b   :  { %s3241_s11 = smov (%p39_p5), 0  }
  0x1c   :  { %41 = sbr.rel (!%p39_p5) target bundleno = 16 (0x10), region = 119 }
  0x23 LB: > { %3235 = dma.done.wait [#allocation5], 16  ;;  %s3243_s11 = sphi %s3241_s11, %s95_s11  }
  0x24   : > { %3236 = vsyncadd [#allocation5], 4294967280  ;;  %s95_s11 = sadd.s32 1, %s3243_s11  }
  0x25   : > { %p92_p6 = scmp.ge.s32.totalorder %s95_s11, 64  }
  0x26   :  { %v108_v1 = vld [vmem:[%s4240_s2 + $0x8] sm:$0xff] (%p92_p6)  ;;  %v110_v3 = vld [vmem:[%s4240_s2 + $0x18] sm:$0xff] (%p92_p6)  ;;  %v107_v6 = vld [vmem:[%s4240_s2] sm:$0xff] (%p92_p6)  ;;  %v3246_v8 = vmov (%p92_p6), 0.0   ;;  %vm2020_vm0 = vcmask (%p92_p6), 1041409   ;;  %vm2022_vm1 = vcmask (%p92_p6), 1042434  }
  0x27   :  { %94 = sbr.rel (!%p92_p6) target bundleno = 35 (0x23), region = 130  ;;  %v112_v2 = vld [vmem:[%s4240_s2 + $0x28] sm:$0xff] (%p92_p6)  ;;  %v114_v5 = vld [vmem:[%s4240_s2 + $0x38] sm:$0xff] (%p92_p6)  ;;  %v111_v7 = vld [vmem:[%s4240_s2 + $0x20] sm:$0xff] (%p92_p6)  ;;  %257 = vmatprep.mubr.f32.mxu0 (%p92_p6), %v3246_v8  ;;  %370 = vmatprep.mubr.f32.mxu1 (%p92_p6), %v3246_v8  ;;  %vm2024_vm2 = vcmask (%p92_p6), 1043459   ;;  %vm2026_vm3 = vcmask (%p92_p6), 1044484  }
  0x28   :  { %v2397_v4 = vpack.c.bf16 (%p92_p6), %v112_v2, %v108_v1  ;;  %v2429_v9 = vpack.c.bf16 (%p92_p6), %v114_v5, %v110_v3  ;;  %v2399_v10 = vpack.c.bf16 (%p92_p6), %v111_v7, %v107_v6  ;;  %v109_v11 = vld [vmem:[%s4240_s2 + $0x10] sm:$0xff] (%p92_p6)  ;;  %v116_v13 = vld [vmem:[%s4240_s2 + $0x48] sm:$0xff] (%p92_p6)  ;;  %v118_v16 = vld [vmem:[%s4240_s2 + $0x58] sm:$0xff] (%p92_p6)  ;;  %vm2028_vm4 = vcmask (%p92_p6), 1045509  }
  0x29   :  { %v113_v12 = vld [vmem:[%s4240_s2 + $0x30] sm:$0xff] (%p92_p6)  ;;  %v120_v15 = vld [vmem:[%s4240_s2 + $0x68] sm:$0xff] (%p92_p6)  ;;  %v122_v17 = vld [vmem:[%s4240_s2 + $0x78] sm:$0xff] (%p92_p6)  ;;  %vm2030_vm5 = vcmask (%p92_p6), 1046534   ;;  %vm2032_vm6 = vcmask (%p92_p6), 1047559   ;;  %vm2067_vm7 = vcmask (%p92_p6), 64512  }
  0x2a   :  { %2398 = vmatprep.subr.bf16.mxu0 (%p92_p6), %v2397_v4  ;;  %v2431_v14 = vpack.c.bf16 (%p92_p6), %v113_v12, %v109_v11  ;;  %2430 = vmatprep.subr.bf16.mxu1 (%p92_p6), %v2429_v9  ;;  %v2401_v18 = vpack.c.bf16 (%p92_p6), %v120_v15, %v116_v13  ;;  %v2433_v19 = vpack.c.bf16 (%p92_p6), %v122_v17, %v118_v16  ;;  %v115_v20 = vld [vmem:[%s4240_s2 + $0x40] sm:$0xff] (%p92_p6)  ;;  %v117_v22 = vld [vmem:[%s4240_s2 + $0x50] sm:$0xff] (%p92_p6)  ;;  %v124_v25 = vld [vmem:[%s4240_s2 + $0x88] sm:$0xff] (%p92_p6)  ;;  %vm3248_vm8 = vmmov (%p92_p6), 0  }
  0x2b   :  { %2400 = vmatpush1.bf16.msra.mxu0 (%p92_p6), %v2399_v10  ;;  %v119_v21 = vld [vmem:[%s4240_s2 + $0x60] sm:$0xff] (%p92_p6)  ;;  %v121_v24 = vld [vmem:[%s4240_s2 + $0x70] sm:$0xff] (%p92_p6)  ;;  %v128_v26 = vld [vmem:[%s4240_s2 + $0xa8] sm:$0xff] (%p92_p6) }
  0x2c   :  { %2432 = vmatpush1.bf16.msra.mxu1 (%p92_p6), %v2431_v14  ;;  %v2403_v23 = vpack.c.bf16 (%p92_p6), %v119_v21, %v115_v20  ;;  %2402 = vmatprep.subr.bf16.mxu0 (%p92_p6), %v2401_v18  ;;  %v2435_v27 = vpack.c.bf16 (%p92_p6), %v121_v24, %v117_v22  ;;  %v2405_v28 = vpack.c.bf16 (%p92_p6), %v128_v26, %v124_v25  ;;  %v126_v29 = vld [vmem:[%s4240_s2 + $0x98] sm:$0xff] (%p92_p6)  ;;  %v123_v31 = vld [vmem:[%s4240_s2 + $0x80] sm:$0xff] (%p92_p6)  ;;  %v125_v34 = vld [vmem:[%s4240_s2 + $0x90] sm:$0xff] (%p92_p6) }
  0x2d   :  { %2434 = vmatprep.subr.bf16.mxu1 (%p92_p6), %v2433_v19  ;;  %v130_v30 = vld [vmem:[%s4240_s2 + $0xb8] sm:$0xff] (%p92_p6)  ;;  %v127_v33 = vld [vmem:[%s4240_s2 + $0xa0] sm:$0xff] (%p92_p6)  ;;  %v129_v35 = vld [vmem:[%s4240_s2 + $0xb0] sm:$0xff] (%p92_p6) }
  0x2e   :  { %v2437_v32 = vpack.c.bf16 %v130_v30, %v126_v29  ;;  %v2407_v36 = vpack.c.bf16 %v127_v33, %v123_v31  ;;  %v132_v37 = vld [vmem:[%s4240_s2 + $0xc8] sm:$0xff]  ;;  %v134_v39 = vld [vmem:[%s4240_s2 + $0xd8] sm:$0xff]  ;;  %v2439_v40 = vpack.c.bf16 %v129_v35, %v125_v34  ;;  %v131_v43 = vld [vmem:[%s4240_s2 + $0xc0] sm:$0xff] }
  0x2f   :  { %2404 = vmatpush1.bf16.msra.mxu0 %v2403_v23  ;;  %v136_v38 = vld [vmem:[%s4240_s2 + $0xe8] sm:$0xff]  ;;  %v138_v42 = vld [vmem:[%s4240_s2 + $0xf8] sm:$0xff]  ;;  %v135_v44 = vld [vmem:[%s4240_s2 + $0xe0] sm:$0xff] }
  0x30   :  { %2436 = vmatpush1.bf16.msra.mxu1 %v2435_v27  ;;  %2406 = vmatprep.subr.bf16.mxu0 %v2405_v28  ;;  %v2409_v41 = vpack.c.bf16 %v136_v38, %v132_v37  ;;  %v2441_v45 = vpack.c.bf16 %v138_v42, %v134_v39  ;;  %v133_v46 = vld [vmem:[%s4240_s2 + $0xd0] sm:$0xff]  ;;  %v140_v48 = vld [vmem:[%s4240_s2 + $0x108] sm:$0xff]  ;;  %v142_v50 = vld [vmem:[%s4240_s2 + $0x118] sm:$0xff]  ;;  %v2411_v52 = vpack.c.bf16 %v135_v44, %v131_v43 }
  0x31   :  { %2438 = vmatprep.subr.bf16.mxu1 %v2437_v32  ;;  %v137_v47 = vld [vmem:[%s4240_s2 + $0xf0] sm:$0xff]  ;;  %v144_v49 = vld [vmem:[%s4240_s2 + $0x128] sm:$0xff]  ;;  %v146_v51 = vld [vmem:[%s4240_s2 + $0x138] sm:$0xff] }
  0x32   :  { %v2443_v53 = vpack.c.bf16 %v137_v47, %v133_v46  ;;  %v2413_v54 = vpack.c.bf16 %v144_v49, %v140_v48  ;;  %v139_v55 = vld [vmem:[%s4240_s2 + $0x100] sm:$0xff]  ;;  %v141_v57 = vld [vmem:[%s4240_s2 + $0x110] sm:$0xff]  ;;  %v2445_v58 = vpack.c.bf16 %v146_v51, %v142_v50  ;;  %v148_v60 = vld [vmem:[%s4240_s2 + $0x148] sm:$0xff] }
  0x33   :  { %2408 = vmatpush1.bf16.msra.mxu0 %v2407_v36  ;;  %v143_v56 = vld [vmem:[%s4240_s2 + $0x120] sm:$0xff]  ;;  %v145_v59 = vld [vmem:[%s4240_s2 + $0x130] sm:$0xff]  ;;  %v152_v61 = vld [vmem:[%s4240_s2 + $0x168] sm:$0xff] }
  0x34   :  { %2440 = vmatpush1.bf16.msra.mxu1 %v2439_v40  ;;  %2410 = vmatprep.subr.bf16.mxu0 %v2409_v41  ;;  %v150_v62 = vld [vmem:[%s4240_s2 + $0x158] sm:$0xff]  ;;  %v2415_v0 = vpack.c.bf16 %v143_v56, %v139_v55  ;;  %v2447_v1 = vpack.c.bf16 %v145_v59, %v141_v57  ;;  %v2417_v2 = vpack.c.bf16 %v152_v61, %v148_v60  ;;  %v147_v3 = vld [vmem:[%s4240_s2 + $0x140] sm:$0xff]  ;;  %v149_v5 = vld [vmem:[%s4240_s2 + $0x150] sm:$0xff] }
  0x35   :  { %2442 = vmatprep.subr.bf16.mxu1 %v2441_v45  ;;  %v154_v63 = vld [vmem:[%s4240_s2 + $0x178] sm:$0xff]  ;;  %v151_v4 = vld [vmem:[%s4240_s2 + $0x160] sm:$0xff]  ;;  %v153_v7 = vld [vmem:[%s4240_s2 + $0x170] sm:$0xff] }
  0x36   :  { %v2449_v6 = vpack.c.bf16 %v154_v63, %v150_v62  ;;  %v156_v9 = vld [vmem:[%s4240_s2 + $0x188] sm:$0xff]  ;;  %v158_v11 = vld [vmem:[%s4240_s2 + $0x198] sm:$0xff]  ;;  %v2419_v13 = vpack.c.bf16 %v151_v4, %v147_v3  ;;  %v2451_v14 = vpack.c.bf16 %v153_v7, %v149_v5  ;;  %v155_v16 = vld [vmem:[%s4240_s2 + $0x180] sm:$0xff] }
  0x37   :  { %2412 = vmatpush1.bf16.msra.mxu0 %v2411_v52  ;;  %v160_v10 = vld [vmem:[%s4240_s2 + $0x1a8] sm:$0xff]  ;;  %v162_v12 = vld [vmem:[%s4240_s2 + $0x1b8] sm:$0xff]  ;;  %v159_v17 = vld [vmem:[%s4240_s2 + $0x1a0] sm:$0xff] }
  0x38   :  { %2444 = vmatpush1.bf16.msra.mxu1 %v2443_v53  ;;  %2414 = vmatprep.subr.bf16.mxu0 %v2413_v54  ;;  %v2421_v15 = vpack.c.bf16 %v160_v10, %v156_v9  ;;  %v157_v18 = vld [vmem:[%s4240_s2 + $0x190] sm:$0xff]  ;;  %v2453_v19 = vpack.c.bf16 %v162_v12, %v158_v11  ;;  %v164_v21 = vld [vmem:[%s4240_s2 + $0x1c8] sm:$0xff]  ;;  %v166_v23 = vld [vmem:[%s4240_s2 + $0x1d8] sm:$0xff]  ;;  %v2423_v25 = vpack.c.bf16 %v159_v17, %v155_v16 }
  0x39   :  { %2446 = vmatprep.subr.bf16.mxu1 %v2445_v58  ;;  %v161_v20 = vld [vmem:[%s4240_s2 + $0x1b0] sm:$0xff]  ;;  %v168_v22 = vld [vmem:[%s4240_s2 + $0x1e8] sm:$0xff]  ;;  %v170_v24 = vld [vmem:[%s4240_s2 + $0x1f8] sm:$0xff] }
  0x3a   :  { %v2455_v26 = vpack.c.bf16 %v161_v20, %v157_v18  ;;  %v2425_v27 = vpack.c.bf16 %v168_v22, %v164_v21  ;;  %v163_v28 = vld [vmem:[%s4240_s2 + $0x1c0] sm:$0xff]  ;;  %v165_v30 = vld [vmem:[%s4240_s2 + $0x1d0] sm:$0xff]  ;;  %v2457_v31 = vpack.c.bf16 %v170_v24, %v166_v23  ;;  %v452_v33 = vld [vmem:[%s4241_s3 + $0x8] sm:$0xff] }
  0x3b   :  { %2416 = vmatpush1.bf16.msra.mxu0 %v2415_v0  ;;  %v167_v29 = vld [vmem:[%s4240_s2 + $0x1e0] sm:$0xff]  ;;  %v169_v32 = vld [vmem:[%s4240_s2 + $0x1f0] sm:$0xff]  ;;  %v456_v34 = vld [vmem:[%s4241_s3 + $0x28] sm:$0xff] }
  0x3c   :  { %2448 = vmatpush1.bf16.msra.mxu1 %v2447_v1  ;;  %2418 = vmatprep.subr.bf16.mxu0 %v2417_v2  ;;  %v454_v35 = vld [vmem:[%s4241_s3 + $0x18] sm:$0xff]  ;;  %v2427_v37 = vpack.c.bf16 %v167_v29, %v163_v28  ;;  %v2459_v38 = vpack.c.bf16 %v169_v32, %v165_v30  ;;  %v3501_v39 = vpack.c.bf16 %v456_v34, %v452_v33  ;;  %v451_v40 = vld [vmem:[%s4241_s3] sm:$0xff]  ;;  %v453_v43 = vld [vmem:[%s4241_s3 + $0x10] sm:$0xff] }
  0x3d   :  { %2450 = vmatprep.subr.bf16.mxu1 %v2449_v6  ;;  %v458_v36 = vld [vmem:[%s4241_s3 + $0x38] sm:$0xff]  ;;  %v455_v41 = vld [vmem:[%s4241_s3 + $0x20] sm:$0xff]  ;;  %v457_v44 = vld [vmem:[%s4241_s3 + $0x30] sm:$0xff] }
  0x3e   :  { %v3509_v42 = vpack.c.bf16 %v458_v36, %v454_v35  ;;  %v460_v45 = vld [vmem:[%s4241_s3 + $0x48] sm:$0xff]  ;;  %v99_v47 = vld [vmem:[#allocation2] sm:$0xff]  ;;  %v3523_v48 = vpack.c.bf16 %v455_v41, %v451_v40  ;;  %v462_v49 = vld [vmem:[%s4241_s3 + $0x58] sm:$0xff]  ;;  %v3532_v51 = vpack.c.bf16 %v457_v44, %v453_v43 }
  0x3f   :  { %2420 = vmatpush1.bf16.msra.mxu0 %v2419_v13  ;;  %v464_v46 = vld [vmem:[%s4241_s3 + $0x68] sm:$0xff]  ;;  %v466_v50 = vld [vmem:[%s4241_s3 + $0x78] sm:$0xff]  ;;  %v459_v52 = vld [vmem:[%s4241_s3 + $0x40] sm:$0xff] }
  0x40   :  { %2452 = vmatpush1.bf16.msra.mxu1 %v2451_v14  ;;  %2422 = vmatprep.subr.bf16.mxu0 %v2421_v15  ;;  %v463_v53 = vld [vmem:[%s4241_s3 + $0x60] sm:$0xff]  ;;  %v3541_v54 = vpack.c.bf16 %v464_v46, %v460_v45  ;;  %v461_v55 = vld [vmem:[%s4241_s3 + $0x50] sm:$0xff]  ;;  %v3549_v57 = vpack.c.bf16 %v466_v50, %v462_v49  ;;  %v468_v58 = vld [vmem:[%s4241_s3 + $0x88] sm:$0xff] }
  0x41   :  { %2454 = vmatprep.subr.bf16.mxu1 %v2453_v19  ;;  %v465_v56 = vld [vmem:[%s4241_s3 + $0x70] sm:$0xff]  ;;  %v472_v59 = vld [vmem:[%s4241_s3 + $0xa8] sm:$0xff]  ;;  %v3558_v61 = vpack.c.bf16 %v463_v53, %v459_v52  ;;  %v470_v62 = vld [vmem:[%s4241_s3 + $0x98] sm:$0xff] }
  0x42   :  { %v100_v60 = vld [vmem:[#allocation2 + $0x8] sm:$0xff]  ;;  %v474_v63 = vld [vmem:[%s4241_s3 + $0xb8] sm:$0xff]  ;;  %v3568_v0 = vpack.c.bf16 %v465_v56, %v461_v55  ;;  %v467_v1 = vld [vmem:[%s4241_s3 + $0x80] sm:$0xff]  ;;  %v3578_v3 = vpack.c.bf16 %v472_v59, %v468_v58 }
  0x43   :  { %2424 = vmatpush1.bf16.msra.mxu0 %v2423_v25  ;;  %v471_v2 = vld [vmem:[%s4241_s3 + $0xa0] sm:$0xff]  ;;  %v469_v4 = vld [vmem:[%s4241_s3 + $0x90] sm:$0xff]  ;;  %v3587_v6 = vpack.c.bf16 %v474_v63, %v470_v62  ;;  %v476_v7 = vld [vmem:[%s4241_s3 + $0xc8] sm:$0xff] }
  0x44   :  { %2456 = vmatpush1.bf16.msra.mxu1 %v2455_v26  ;;  %2426 = vmatprep.subr.bf16.mxu0 %v2425_v27  ;;  %v473_v5 = vld [vmem:[%s4241_s3 + $0xb0] sm:$0xff]  ;;  %v480_v9 = vld [vmem:[%s4241_s3 + $0xe8] sm:$0xff]  ;;  %v3596_v11 = vpack.c.bf16 %v471_v2, %v467_v1  ;;  %v478_v12 = vld [vmem:[%s4241_s3 + $0xd8] sm:$0xff] }
  0x45   :  { %2458 = vmatprep.subr.bf16.mxu1 %v2457_v31  ;;  %v101_v10 = vld [vmem:[#allocation2 + $0x10] sm:$0xff]  ;;  %v482_v13 = vld [vmem:[%s4241_s3 + $0xf8] sm:$0xff]  ;;  %v3606_v14 = vpack.c.bf16 %v473_v5, %v469_v4  ;;  %v475_v15 = vld [vmem:[%s4241_s3 + $0xc0] sm:$0xff]  ;;  %v3616_v17 = vpack.c.bf16 %v480_v9, %v476_v7 }
  0x46   :  { %v479_v16 = vld [vmem:[%s4241_s3 + $0xe0] sm:$0xff]  ;;  %v477_v18 = vld [vmem:[%s4241_s3 + $0xd0] sm:$0xff]  ;;  %v3625_v20 = vpack.c.bf16 %v482_v13, %v478_v12  ;;  %v484_v21 = vld [vmem:[%s4241_s3 + $0x108] sm:$0xff] }
  0x47   :  { %2428 = vmatpush1.bf16.msra.mxu0 %v2427_v37  ;;  %v481_v19 = vld [vmem:[%s4241_s3 + $0xf0] sm:$0xff]  ;;  %v488_v22 = vld [vmem:[%s4241_s3 + $0x128] sm:$0xff]  ;;  %v102_v23 = vld [vmem:[#allocation2 + $0x18] sm:$0xff]  ;;  %v3634_v24 = vpack.c.bf16 %v479_v16, %v475_v15 }
  0x48   :  { %2460 = vmatpush1.bf16.msra.mxu1 %v2459_v38  ;;  %2462 = vmatprep.subr.bf16.mxu0 %v3501_v39  ;;  %v486_v25 = vld [vmem:[%s4241_s3 + $0x118] sm:$0xff]  ;;  %v3644_v27 = vpack.c.bf16 %v481_v19, %v477_v18  ;;  %v483_v28 = vld [vmem:[%s4241_s3 + $0x100] sm:$0xff]  ;;  %v3654_v30 = vpack.c.bf16 %v488_v22, %v484_v21  ;;  %v485_v31 = vld [vmem:[%s4241_s3 + $0x110] sm:$0xff] }
  0x49   :  { %2494 = vmatprep.subr.bf16.mxu1 %v3509_v42  ;;  %v490_v26 = vld [vmem:[%s4241_s3 + $0x138] sm:$0xff]  ;;  %v487_v29 = vld [vmem:[%s4241_s3 + $0x120] sm:$0xff]  ;;  %v489_v32 = vld [vmem:[%s4241_s3 + $0x130] sm:$0xff] }
  0x4a   :  { %258 = vmatmul.mubr.f32.vlgmr.msra.gmra.mrb[0].mxu0 %v99_v47  ;;  %v3663_v33 = vpack.c.bf16 %v490_v26, %v486_v25  ;;  %v492_v34 = vld [vmem:[%s4241_s3 + $0x148] sm:$0xff]  ;;  %v103_v36 = vld [vmem:[#allocation2 + $0x20] sm:$0xff]  ;;  %v3672_v37 = vpack.c.bf16 %v487_v29, %v483_v28  ;;  %v494_v38 = vld [vmem:[%s4241_s3 + $0x158] sm:$0xff]  ;;  %v3682_v41 = vpack.c.bf16 %v489_v32, %v485_v31  ;;  %v173_v29 = vlaneseq }
  0x4b   :  { %371 = vmatmul.mubr.f32.vlgmr.msra.gmra.mrb[0].mxu1 %v99_v47  ;;  %2464 = vmatpush1.bf16.msra.mxu0 %v3523_v48  ;;  %v496_v35 = vld [vmem:[%s4241_s3 + $0x168] sm:$0xff]  ;;  %v498_v40 = vld [vmem:[%s4241_s3 + $0x178] sm:$0xff]  ;;  %v491_v43 = vld [vmem:[%s4241_s3 + $0x140] sm:$0xff] }
  0x4c   :  { %2496 = vmatpush1.bf16.msra.mxu1 %v3532_v51  ;;  %263 = vmatprep.mubr.f32.mxu0 %v3246_v8  ;;  %v495_v44 = vld [vmem:[%s4241_s3 + $0x160] sm:$0xff]  ;;  %v3692_v45 = vpack.c.bf16 %v496_v35, %v492_v34  ;;  %v493_v46 = vld [vmem:[%s4241_s3 + $0x150] sm:$0xff]  ;;  %v3701_v49 = vpack.c.bf16 %v498_v40, %v494_v38  ;;  %v500_v50 = vld [vmem:[%s4241_s3 + $0x188] sm:$0xff]  ;;  %v3832_v31 = vshrl.u32 %v173_v29, 7 }
  0x4d   :  { %376 = vmatprep.mubr.f32.mxu1 %v3246_v8  ;;  %2466 = vmatprep.subr.bf16.mxu0 %v3541_v54  ;;  %v497_v47 = vld [vmem:[%s4241_s3 + $0x170] sm:$0xff]  ;;  %v504_v52 = vld [vmem:[%s4241_s3 + $0x1a8] sm:$0xff]  ;;  %v3710_v55 = vpack.c.bf16 %v495_v44, %v491_v43  ;;  %v502_v56 = vld [vmem:[%s4241_s3 + $0x198] sm:$0xff] }
  0x4e   :  { %264 = vmatmul.mubr.f32.gmra.mrb[2].mxu0 %v100_v60  ;;  %2498 = vmatprep.subr.bf16.mxu1 %v3549_v57  ;;  %v104_v53 = vld [vmem:[#allocation2 + $0x28] sm:$0xff]  ;;  %v506_v58 = vld [vmem:[%s4241_s3 + $0x1b8] sm:$0xff]  ;;  %v3720_v59 = vpack.c.bf16 %v497_v47, %v493_v46  ;;  %v503_v62 = vld [vmem:[%s4241_s3 + $0x1a0] sm:$0xff]  ;;  %v3730_v63 = vpack.c.bf16 %v504_v52, %v500_v50  ;;  %v175_v32 = vsub.s32 0, %v3832_v31  ;;  %v179_v35 = vsub.s32 1, %v3832_v31 }
  0x4f   :  { %377 = vmatmul.mubr.f32.gmra.mrb[2].mxu1 %v100_v60  ;;  %2468 = vmatpush1.bf16.msra.mxu0 %v3558_v61  ;;  %v499_v60 = vld [vmem:[%s4241_s3 + $0x180] sm:$0xff]  ;;  %v501_v1 = vld [vmem:[%s4241_s3 + $0x190] sm:$0xff]  ;;  %v3739_v4 = vpack.c.bf16 %v506_v58, %v502_v56  ;;  %v508_v5 = vld [vmem:[%s4241_s3 + $0x1c8] sm:$0xff]  ;;  %v187_v43 = vsub.s32 3, %v3832_v31 }
  0x50   :  { %2500 = vmatpush1.bf16.msra.mxu1 %v3568_v0  ;;  %269 = vmatprep.mubr.f32.mxu0 %v3246_v8  ;;  %v505_v2 = vld [vmem:[%s4241_s3 + $0x1b0] sm:$0xff]  ;;  %v512_v7 = vld [vmem:[%s4241_s3 + $0x1e8] sm:$0xff]  ;;  %v510_v12 = vld [vmem:[%s4241_s3 + $0x1d8] sm:$0xff] }
  0x51   :  { %382 = vmatprep.mubr.f32.mxu1 %v3246_v8  ;;  %2470 = vmatprep.subr.bf16.mxu0 %v3578_v3  ;;  %v105_v9 = vld [vmem:[#allocation2 + $0x30] sm:$0xff]  ;;  %v514_v13 = vld [vmem:[%s4241_s3 + $0x1f8] sm:$0xff]  ;;  %v3758_v15 = vpack.c.bf16 %v505_v2, %v501_v1  ;;  %v507_v16 = vld [vmem:[%s4241_s3 + $0x1c0] sm:$0xff]  ;;  %v3768_v19 = vpack.c.bf16 %v512_v7, %v508_v5 }
  0x52   :  { %270 = vmatmul.mubr.f32.gmra.mrb[4].mxu0 %v101_v10  ;;  %2502 = vmatprep.subr.bf16.mxu1 %v3587_v6  ;;  %v511_v18 = vld [vmem:[%s4241_s3 + $0x1e0] sm:$0xff]  ;;  %v509_v21 = vld [vmem:[%s4241_s3 + $0x1d0] sm:$0xff]  ;;  %v106_v25 = vld [vmem:[#allocation2 + $0x38] sm:$0xff] }
  0x53   :  { %383 = vmatmul.mubr.f32.gmra.mrb[4].mxu1 %v101_v10  ;;  %2472 = vmatpush1.bf16.msra.mxu0 %v3596_v11  ;;  %v3748_v10 = vpack.c.bf16 %v503_v62, %v499_v60  ;;  %v513_v22 = vld [vmem:[%s4241_s3 + $0x1f0] sm:$0xff]  ;;  %v3780_v26 = vpack.c.bf16 %v511_v18, %v507_v16  ;;  %v171_v34 = vld [vmem:[%s4242_s4] sm:$0xf]  ;;  %v183_v60 = vsub.s32 2, %v3832_v31 }
  0x54   :  { %2504 = vmatpush1.bf16.msra.mxu1 %v3606_v14  ;;  %275 = vmatprep.mubr.f32.mxu0 %v3246_v8  ;;  %v3784_v28 = vpack.c.bf16 %v513_v22, %v509_v21  ;;  %v3845_v38 = vrot.slane %v171_v34, %v179_v35  ;;  %v3852_v58 = vrot.slane %v171_v34, %v187_v43 }
  0x55   :  { %388 = vmatprep.mubr.f32.mxu1 %v3246_v8  ;;  %2474 = vmatprep.subr.bf16.mxu0 %v3616_v17  ;;  %v3858_v1 = vrot.slane %v171_v34, %v183_v60 }
  0x56   :  { %276 = vmatmul.mubr.f32.gmra.mrb[6].mxu0 %v102_v23  ;;  %2506 = vmatprep.subr.bf16.mxu1 %v3625_v20 }
  0x57   :  { %389 = vmatmul.mubr.f32.gmra.mrb[6].mxu1 %v102_v23  ;;  %2476 = vmatpush1.bf16.msra.mxu0 %v3634_v24  ;;  %v3777_v23 = vpack.c.bf16 %v514_v13, %v510_v12 }
  0x58   :  { %2508 = vmatpush1.bf16.msra.mxu1 %v3644_v27  ;;  %281 = vmatprep.mubr.f32.mxu0 %v3246_v8 }
  0x59   :  { %394 = vmatprep.mubr.f32.mxu1 %v3246_v8  ;;  %2478 = vmatprep.subr.bf16.mxu0 %v3654_v30 }
  0x5a   :  { %282 = vmatmul.mubr.f32.gmra.mrb[8].mxu0 %v103_v36  ;;  %2510 = vmatprep.subr.bf16.mxu1 %v3663_v33 }
  0x5b   :  { %395 = vmatmul.mubr.f32.gmra.mrb[8].mxu1 %v103_v36  ;;  %2480 = vmatpush1.bf16.msra.mxu0 %v3672_v37  ;;  %v3841_v36 = vrot.slane %v171_v34, %v175_v32 }
  0x5c   :  { %2512 = vmatpush1.bf16.msra.mxu1 %v3682_v41  ;;  %287 = vmatprep.mubr.f32.mxu0 %v3246_v8 }
  0x5d   :  { %400 = vmatprep.mubr.f32.mxu1 %v3246_v8  ;;  %2482 = vmatprep.subr.bf16.mxu0 %v3692_v45 }
  0x5e   :  { %288 = vmatmul.mubr.f32.gmra.mrb[10].mxu0 %v104_v53  ;;  %2514 = vmatprep.subr.bf16.mxu1 %v3701_v49 }
  0x5f   :  { %401 = vmatmul.mubr.f32.gmra.mrb[10].mxu1 %v104_v53  ;;  %2484 = vmatpush1.bf16.msra.mxu0 %v3710_v55 }
  0x60   :  { %2516 = vmatpush1.bf16.msra.mxu1 %v3720_v59  ;;  %293 = vmatprep.mubr.f32.mxu0 %v3246_v8 }
  0x61   :  { %406 = vmatprep.mubr.f32.mxu1 %v3246_v8  ;;  %2486 = vmatprep.subr.bf16.mxu0 %v3730_v63 }
  0x62   :  { %294 = vmatmul.mubr.f32.gmra.mrb[12].mxu0 %v105_v9  ;;  %2518 = vmatprep.subr.bf16.mxu1 %v3739_v4 }
  0x63   :  { %407 = vmatmul.mubr.f32.gmra.mrb[12].mxu1 %v105_v9  ;;  %2488 = vmatpush1.bf16.msra.mxu0 %v3748_v10 }
  0x64   :  { %2520 = vmatpush1.bf16.msra.mxu1 %v3758_v15  ;;  %299 = vmatprep.mubr.f32.mxu0 %v3246_v8 }
  0x65   :  { %412 = vmatprep.mubr.f32.mxu1 %v3246_v8  ;;  %2490 = vmatprep.subr.bf16.mxu0 %v3768_v19 }
  0x66   :  { %300 = vmatmul.mubr.f32.gmra.mrb[14].mxu0 %v106_v25  ;;  %2522 = vmatprep.subr.bf16.mxu1 %v3777_v23 }
  0x67   :  { %413 = vmatmul.mubr.f32.gmra.mrb[14].mxu1 %v106_v25  ;;  %2492 = vmatpush1.bf16.msra.mxu0 %v3780_v26 }
  0x68   :  { %2524 = vmatpush1.bf16.msra.mxu1 %v3784_v28  ;;  %586 = vmatprep.mubr.f32.mxu0 %v3246_v8 }
  0x69   :  { %657 = vmatprep.mubr.f32.mxu1 %v3246_v8  ;;  %2526 = vmatprep.subr.bf16.mxu0 %v3501_v39 }
  0x6a   :  { %587 = vmatmul.mubr.f32.vlgmr.msra.gmra.mrb[0].mxu0 %v3246_v8  ;;  %2558 = vmatprep.subr.bf16.mxu1 %v3509_v42 }
  0x6b   :  { %658 = vmatmul.mubr.f32.vlgmr.msra.gmra.mrb[0].mxu1 %v3246_v8  ;;  %2528 = vmatpush1.bf16.msra.mxu0 %v3523_v48 }
  0x6c   :  { %2560 = vmatpush1.bf16.msra.mxu1 %v3532_v51  ;;  %2530 = vmatprep.subr.bf16.mxu0 %v3541_v54 }
  0x6d   :  { %2562 = vmatprep.subr.bf16.mxu1 %v3549_v57  ;;  %764 = vmatprep.mubr.f32.mxu0 %v3246_v8 }
  0x6e   :  { %835 = vmatprep.mubr.f32.mxu1 %v3246_v8 }
  0x6f   :  { %2532 = vmatpush1.bf16.msra.mxu0 %v3558_v61 }
  0x70   :  { %2564 = vmatpush1.bf16.msra.mxu1 %v3568_v0  ;;  %2534 = vmatprep.subr.bf16.mxu0 %v3578_v3 }
  0x71   :  { %2566 = vmatprep.subr.bf16.mxu1 %v3587_v6 }
  0x73   :  { %2536 = vmatpush1.bf16.msra.mxu0 %v3596_v11 }
  0x74   :  { %2568 = vmatpush1.bf16.msra.mxu1 %v3606_v14  ;;  %2538 = vmatprep.subr.bf16.mxu0 %v3616_v17 }
  0x75   :  { %2570 = vmatprep.subr.bf16.mxu1 %v3625_v20 }
  0x77   :  { %2540 = vmatpush1.bf16.msra.mxu0 %v3634_v24 }
  0x78   :  { %2572 = vmatpush1.bf16.msra.mxu1 %v3644_v27  ;;  %2542 = vmatprep.subr.bf16.mxu0 %v3654_v30 }
  0x79   :  { %2574 = vmatprep.subr.bf16.mxu1 %v3663_v33 }
  0x7b   :  { %2544 = vmatpush1.bf16.msra.mxu0 %v3672_v37 }
  0x7c   :  { %2576 = vmatpush1.bf16.msra.mxu1 %v3682_v41  ;;  %2546 = vmatprep.subr.bf16.mxu0 %v3692_v45 }
  0x7d   :  { %2578 = vmatprep.subr.bf16.mxu1 %v3701_v49 }
  0x7f   :  { %2548 = vmatpush1.bf16.msra.mxu0 %v3710_v55 }
  0x80   :  { %2580 = vmatpush1.bf16.msra.mxu1 %v3720_v59  ;;  %2550 = vmatprep.subr.bf16.mxu0 %v3730_v63 }
  0x81   :  { %2582 = vmatprep.subr.bf16.mxu1 %v3739_v4 }
  0x83   :  { %2552 = vmatpush1.bf16.msra.mxu0 %v3748_v10 }
  0x84   :  { %2584 = vmatpush1.bf16.msra.mxu1 %v3758_v15  ;;  %2554 = vmatprep.subr.bf16.mxu0 %v3768_v19 }
  0x85   :  { %2586 = vmatprep.subr.bf16.mxu1 %v3777_v23 }
  0x87   :  { %2556 = vmatpush1.bf16.msra.mxu0 %v3780_v26 }
  0x88   :  { %2588 = vmatpush1.bf16.msra.mxu1 %v3784_v28  ;;  %2590 = vmatprep.subr.bf16.mxu0 %v3501_v39 }
  0x89   :  { %2622 = vmatprep.subr.bf16.mxu1 %v3509_v42 }
 0x13d   :  { %v588_v40 = vpop.f32.mrb[0].mxu0 }
 0x13e   :  { %v2997_v44 = vadd.f32 %v588_v40, %v3841_v36  ;;  %v659_v46 = vpop.f32.mrb[0].mxu1  ;;  %v590_v47 = vpop.f32.mrb[1].mxu0 }
 0x13f   :  { %v2998_v50 = vadd.f32 %v590_v47, %v3845_v38  ;;  %v661_v52 = vpop.f32.mrb[1].mxu1  ;;  %v3013_v5 = vadd.f32 %v659_v46, %v3858_v1 }
 0x140   :  { %v2319_v53 = vmul.f32 -1.442695, %v2997_v44  ;;  %v3014_v62 = vadd.f32 %v661_v52, %v3852_v58 }
 0x141   :  { %v2320_v56 = vmul.f32 -1.442695, %v2998_v50 }
 0x142   :  { %3081 = vpow2.f32 %v2319_v53  ;;  %v2321_v2 = vmul.f32 -1.442695, %v3014_v62 }
 0x143   :  { %3083 = vpow2.f32 %v2320_v56 }
 0x144   :  { %3085 = vpow2.f32 %v2321_v2 }
 0x145   :  { %3087 = vtanh.f32 %v3013_v5 }
 0x14c   :  { %v3082_v7 = vpop.eup %3081 }
 0x14d   :  { %v3084_v9 = vpop.eup %3083  ;;  %v671_v12 = vadd.f32 1.0, %v3082_v7 }
 0x14e   :  { %v677_v13 = vadd.f32 1.0, %v3084_v9  ;;  %v3086_v16 = vpop.eup %3085 }
 0x14f   :  { %3089 = vrcp.f32 %v671_v12  ;;  %v3088_v18 = vpop.eup %3087  ;;  %v684_v40 = vadd.f32 1.0, %v3086_v16 }
 0x150   :  { %3091 = vrcp.f32 %v677_v13 }
 0x151   :  { %3093 = vrcp.f32 %v684_v40 }
 0x159   :  { %v3090_v21 = vpop.eup %3089 }
 0x15a   :  { %v3092_v22 = vpop.eup %3091  ;;  %v688_v25 = vmul.f32 %v3090_v21, %v3088_v18 }
 0x15b   :  { %v687_v44 = vmul.f32 0.0, %v3092_v22  ;;  %v3094_v46 = vpop.eup %3093 }
 0x15d   :  { %v3861_v34 = vadd.f32 %v688_v25, %v687_v44 }
 0x15f   :  { %3095 = vtanh.f32 %v3861_v34 }
 0x169   :  { %v3096_v47 = vpop.eup %3095 }
 0x16a   :  { %v3864_v50 = vmul.f32 %v3096_v47, %v3094_v46 }
 0x16c   :  { %765 = vmatmul.mubr.f32.vlgmr.msra.gmra.mrb[2].mxu0 %v3864_v50  ;;  %836 = vmatmul.mubr.f32.vlgmr.msra.gmra.mrb[2].mxu1 %v3864_v50 }
 0x16d   :  { %2592 = vmatpush1.bf16.msra.mxu0 %v3523_v48  ;;  %2624 = vmatpush1.bf16.msra.mxu1 %v3532_v51 }
 0x16e   :  { %2594 = vmatprep.subr.bf16.mxu0 %v3541_v54  ;;  %2626 = vmatprep.subr.bf16.mxu1 %v3549_v57 }
 0x16f   :  { %943 = vmatprep.mubr.f32.mxu0 %v3246_v8  ;;  %1014 = vmatprep.mubr.f32.mxu1 %v3246_v8 }
 0x171   :  { %2596 = vmatpush1.bf16.msra.mxu0 %v3558_v61  ;;  %2628 = vmatpush1.bf16.msra.mxu1 %v3568_v0 }
 0x172   :  { %2598 = vmatprep.subr.bf16.mxu0 %v3578_v3  ;;  %2630 = vmatprep.subr.bf16.mxu1 %v3587_v6 }
 0x175   :  { %2600 = vmatpush1.bf16.msra.mxu0 %v3596_v11  ;;  %2632 = vmatpush1.bf16.msra.mxu1 %v3606_v14 }
 0x176   :  { %2602 = vmatprep.subr.bf16.mxu0 %v3616_v17  ;;  %2634 = vmatprep.subr.bf16.mxu1 %v3625_v20 }
 0x179   :  { %2604 = vmatpush1.bf16.msra.mxu0 %v3634_v24  ;;  %2636 = vmatpush1.bf16.msra.mxu1 %v3644_v27 }
 0x17a   :  { %2606 = vmatprep.subr.bf16.mxu0 %v3654_v30  ;;  %2638 = vmatprep.subr.bf16.mxu1 %v3663_v33 }
 0x17d   :  { %2608 = vmatpush1.bf16.msra.mxu0 %v3672_v37  ;;  %2640 = vmatpush1.bf16.msra.mxu1 %v3682_v41 }
 0x17e   :  { %2610 = vmatprep.subr.bf16.mxu0 %v3692_v45  ;;  %2642 = vmatprep.subr.bf16.mxu1 %v3701_v49 }
 0x181   :  { %2612 = vmatpush1.bf16.msra.mxu0 %v3710_v55  ;;  %2644 = vmatpush1.bf16.msra.mxu1 %v3720_v59 }
 0x182   :  { %2614 = vmatprep.subr.bf16.mxu0 %v3730_v63  ;;  %2646 = vmatprep.subr.bf16.mxu1 %v3739_v4 }
 0x185   :  { %2616 = vmatpush1.bf16.msra.mxu0 %v3748_v10  ;;  %2648 = vmatpush1.bf16.msra.mxu1 %v3758_v15 }
 0x186   :  { %2618 = vmatprep.subr.bf16.mxu0 %v3768_v19  ;;  %2650 = vmatprep.subr.bf16.mxu1 %v3777_v23 }
 0x189   :  { %2620 = vmatpush1.bf16.msra.mxu0 %v3780_v26  ;;  %2652 = vmatpush1.bf16.msra.mxu1 %v3784_v28 }
 0x18a   :  { %2654 = vmatprep.subr.bf16.mxu0 %v3501_v39  ;;  %2686 = vmatprep.subr.bf16.mxu1 %v3509_v42 }
 0x23f   :  { %v766_v52 = vpop.f32.mrb[2].mxu0  ;;  %v837_v53 = vpop.f32.mrb[2].mxu1 }
 0x240   :  { %v2999_v56 = vadd.f32 %v766_v52, %v3841_v36  ;;  %v768_v62 = vpop.f32.mrb[3].mxu0  ;;  %v839_v2 = vpop.f32.mrb[3].mxu1  ;;  %v3015_v16 = vadd.f32 %v837_v53, %v3858_v1 }
 0x241   :  { %v3000_v5 = vadd.f32 %v768_v62, %v3845_v38  ;;  %v3016_v12 = vadd.f32 %v839_v2, %v3852_v58 }
 0x242   :  { %v2322_v7 = vmul.f32 -1.442695, %v2999_v56 }
 0x243   :  { %v2323_v9 = vmul.f32 -1.442695, %v3000_v5  ;;  %v2324_v13 = vmul.f32 -1.442695, %v3016_v12 }
 0x244   :  { %3097 = vpow2.f32 %v2322_v7 }
 0x245   :  { %3099 = vpow2.f32 %v2323_v9 }
 0x246   :  { %3101 = vpow2.f32 %v2324_v13 }
 0x247   :  { %3103 = vtanh.f32 %v3015_v16 }
 0x24e   :  { %v3098_v18 = vpop.eup %3097 }
 0x24f   :  { %v3100_v21 = vpop.eup %3099  ;;  %v849_v22 = vadd.f32 1.0, %v3098_v18 }
 0x250   :  { %v855_v25 = vadd.f32 1.0, %v3100_v21  ;;  %v3102_v40 = vpop.eup %3101 }
 0x251   :  { %3105 = vrcp.f32 %v849_v22  ;;  %v3104_v44 = vpop.eup %3103  ;;  %v862_v56 = vadd.f32 1.0, %v3102_v40 }
 0x252   :  { %3107 = vrcp.f32 %v855_v25 }
 0x253   :  { %3109 = vrcp.f32 %v862_v56 }
 0x25b   :  { %v3106_v46 = vpop.eup %3105 }
 0x25c   :  { %v3108_v47 = vpop.eup %3107  ;;  %v866_v52 = vmul.f32 %v3106_v46, %v3104_v44 }
 0x25d   :  { %v865_v62 = vmul.f32 %v3108_v47, %v3861_v34  ;;  %v3110_v53 = vpop.eup %3109 }
 0x25f   :  { %v3907_v2 = vadd.f32 %v866_v52, %v865_v62 }
 0x261   :  { %3111 = vtanh.f32 %v3907_v2 }
 0x26b   :  { %v3112_v5 = vpop.eup %3111 }
 0x26c   :  { %v3910_v7 = vmul.f32 %v3112_v5, %v3110_v53 }
 0x26e   :  { %944 = vmatmul.mubr.f32.vlgmr.msra.gmra.mrb[4].mxu0 %v3910_v7  ;;  %1015 = vmatmul.mubr.f32.vlgmr.msra.gmra.mrb[4].mxu1 %v3910_v7 }
 0x26f   :  { %2656 = vmatpush1.bf16.msra.mxu0 %v3523_v48  ;;  %2688 = vmatpush1.bf16.msra.mxu1 %v3532_v51 }
 0x270   :  { %2658 = vmatprep.subr.bf16.mxu0 %v3541_v54  ;;  %2690 = vmatprep.subr.bf16.mxu1 %v3549_v57 }
 0x271   :  { %1122 = vmatprep.mubr.f32.mxu0 %v3246_v8  ;;  %1193 = vmatprep.mubr.f32.mxu1 %v3246_v8 }
 0x273   :  { %2660 = vmatpush1.bf16.msra.mxu0 %v3558_v61  ;;  %2692 = vmatpush1.bf16.msra.mxu1 %v3568_v0 }
 0x274   :  { %2662 = vmatprep.subr.bf16.mxu0 %v3578_v3  ;;  %2694 = vmatprep.subr.bf16.mxu1 %v3587_v6 }
 0x277   :  { %2664 = vmatpush1.bf16.msra.mxu0 %v3596_v11  ;;  %2696 = vmatpush1.bf16.msra.mxu1 %v3606_v14 }
 0x278   :  { %2666 = vmatprep.subr.bf16.mxu0 %v3616_v17  ;;  %2698 = vmatprep.subr.bf16.mxu1 %v3625_v20 }
 0x27b   :  { %2668 = vmatpush1.bf16.msra.mxu0 %v3634_v24  ;;  %2700 = vmatpush1.bf16.msra.mxu1 %v3644_v27 }
 0x27c   :  { %2670 = vmatprep.subr.bf16.mxu0 %v3654_v30  ;;  %2702 = vmatprep.subr.bf16.mxu1 %v3663_v33 }
 0x27f   :  { %2672 = vmatpush1.bf16.msra.mxu0 %v3672_v37  ;;  %2704 = vmatpush1.bf16.msra.mxu1 %v3682_v41 }
 0x280   :  { %2674 = vmatprep.subr.bf16.mxu0 %v3692_v45  ;;  %2706 = vmatprep.subr.bf16.mxu1 %v3701_v49 }
 0x283   :  { %2676 = vmatpush1.bf16.msra.mxu0 %v3710_v55  ;;  %2708 = vmatpush1.bf16.msra.mxu1 %v3720_v59 }
 0x284   :  { %2678 = vmatprep.subr.bf16.mxu0 %v3730_v63  ;;  %2710 = vmatprep.subr.bf16.mxu1 %v3739_v4 }
 0x287   :  { %2680 = vmatpush1.bf16.msra.mxu0 %v3748_v10  ;;  %2712 = vmatpush1.bf16.msra.mxu1 %v3758_v15 }
 0x288   :  { %2682 = vmatprep.subr.bf16.mxu0 %v3768_v19  ;;  %2714 = vmatprep.subr.bf16.mxu1 %v3777_v23 }
 0x28b   :  { %2684 = vmatpush1.bf16.msra.mxu0 %v3780_v26  ;;  %2716 = vmatpush1.bf16.msra.mxu1 %v3784_v28 }
 0x28c   :  { %2718 = vmatprep.subr.bf16.mxu0 %v3501_v39  ;;  %2750 = vmatprep.subr.bf16.mxu1 %v3509_v42 }
 0x341   :  { %v945_v34 = vpop.f32.mrb[4].mxu0  ;;  %v1016_v9 = vpop.f32.mrb[4].mxu1 }
 0x342   :  { %v3001_v12 = vadd.f32 %v945_v34, %v3841_v36  ;;  %v947_v13 = vpop.f32.mrb[5].mxu0  ;;  %v1018_v16 = vpop.f32.mrb[5].mxu1  ;;  %v3017_v44 = vadd.f32 %v1016_v9, %v3858_v1 }
 0x343   :  { %v3002_v18 = vadd.f32 %v947_v13, %v3845_v38  ;;  %v3018_v25 = vadd.f32 %v1018_v16, %v3852_v58 }
 0x344   :  { %v2325_v21 = vmul.f32 -1.442695, %v3001_v12 }
 0x345   :  { %v2326_v22 = vmul.f32 -1.442695, %v3002_v18  ;;  %v2327_v40 = vmul.f32 -1.442695, %v3018_v25 }
 0x346   :  { %3113 = vpow2.f32 %v2325_v21 }
 0x347   :  { %3115 = vpow2.f32 %v2326_v22 }
 0x348   :  { %3117 = vpow2.f32 %v2327_v40 }
 0x349   :  { %3119 = vtanh.f32 %v3017_v44 }
 0x350   :  { %v3114_v46 = vpop.eup %3113 }
 0x351   :  { %v3116_v47 = vpop.eup %3115  ;;  %v1028_v52 = vadd.f32 1.0, %v3114_v46 }
 0x352   :  { %v1034_v56 = vadd.f32 1.0, %v3116_v47  ;;  %v3118_v62 = vpop.eup %3117 }
 0x353   :  { %3121 = vrcp.f32 %v1028_v52  ;;  %v3120_v53 = vpop.eup %3119  ;;  %v1041_v13 = vadd.f32 1.0, %v3118_v62 }
 0x354   :  { %3123 = vrcp.f32 %v1034_v56 }
 0x355   :  { %3125 = vrcp.f32 %v1041_v13 }
 0x35d   :  { %v3122_v5 = vpop.eup %3121 }
 0x35e   :  { %v3124_v34 = vpop.eup %3123  ;;  %v1045_v12 = vmul.f32 %v3122_v5, %v3120_v53 }
 0x35f   :  { %v1044_v18 = vmul.f32 %v3124_v34, %v3907_v2  ;;  %v3126_v9 = vpop.eup %3125 }
 0x361   :  { %v3953_v16 = vadd.f32 %v1045_v12, %v1044_v18 }
 0x363   :  { %3127 = vtanh.f32 %v3953_v16 }
 0x36d   :  { %v3128_v21 = vpop.eup %3127 }
 0x36e   :  { %v3956_v22 = vmul.f32 %v3128_v21, %v3126_v9 }
 0x370   :  { %1123 = vmatmul.mubr.f32.vlgmr.msra.gmra.mrb[6].mxu0 %v3956_v22  ;;  %1194 = vmatmul.mubr.f32.vlgmr.msra.gmra.mrb[6].mxu1 %v3956_v22 }
 0x371   :  { %2720 = vmatpush1.bf16.msra.mxu0 %v3523_v48  ;;  %2752 = vmatpush1.bf16.msra.mxu1 %v3532_v51 }
 0x372   :  { %2722 = vmatprep.subr.bf16.mxu0 %v3541_v54  ;;  %2754 = vmatprep.subr.bf16.mxu1 %v3549_v57 }
 0x373   :  { %1301 = vmatprep.mubr.f32.mxu0 %v3246_v8  ;;  %1372 = vmatprep.mubr.f32.mxu1 %v3246_v8 }
 0x375   :  { %2724 = vmatpush1.bf16.msra.mxu0 %v3558_v61  ;;  %2756 = vmatpush1.bf16.msra.mxu1 %v3568_v0 }
 0x376   :  { %2726 = vmatprep.subr.bf16.mxu0 %v3578_v3  ;;  %2758 = vmatprep.subr.bf16.mxu1 %v3587_v6 }
 0x379   :  { %2728 = vmatpush1.bf16.msra.mxu0 %v3596_v11  ;;  %2760 = vmatpush1.bf16.msra.mxu1 %v3606_v14 }
 0x37a   :  { %2730 = vmatprep.subr.bf16.mxu0 %v3616_v17  ;;  %2762 = vmatprep.subr.bf16.mxu1 %v3625_v20 }
 0x37d   :  { %2732 = vmatpush1.bf16.msra.mxu0 %v3634_v24  ;;  %2764 = vmatpush1.bf16.msra.mxu1 %v3644_v27 }
 0x37e   :  { %2734 = vmatprep.subr.bf16.mxu0 %v3654_v30  ;;  %2766 = vmatprep.subr.bf16.mxu1 %v3663_v33 }
 0x381   :  { %2736 = vmatpush1.bf16.msra.mxu0 %v3672_v37  ;;  %2768 = vmatpush1.bf16.msra.mxu1 %v3682_v41 }
 0x382   :  { %2738 = vmatprep.subr.bf16.mxu0 %v3692_v45  ;;  %2770 = vmatprep.subr.bf16.mxu1 %v3701_v49 }
 0x385   :  { %2740 = vmatpush1.bf16.msra.mxu0 %v3710_v55  ;;  %2772 = vmatpush1.bf16.msra.mxu1 %v3720_v59 }
 0x386   :  { %2742 = vmatprep.subr.bf16.mxu0 %v3730_v63  ;;  %2774 = vmatprep.subr.bf16.mxu1 %v3739_v4 }
 0x389   :  { %2744 = vmatpush1.bf16.msra.mxu0 %v3748_v10  ;;  %2776 = vmatpush1.bf16.msra.mxu1 %v3758_v15 }
 0x38a   :  { %2746 = vmatprep.subr.bf16.mxu0 %v3768_v19  ;;  %2778 = vmatprep.subr.bf16.mxu1 %v3777_v23 }
 0x38d   :  { %2748 = vmatpush1.bf16.msra.mxu0 %v3780_v26  ;;  %2780 = vmatpush1.bf16.msra.mxu1 %v3784_v28 }
 0x38e   :  { %2782 = vmatprep.subr.bf16.mxu0 %v3501_v39  ;;  %2814 = vmatprep.subr.bf16.mxu1 %v3509_v42 }
 0x443   :  { %v1124_v2 = vpop.f32.mrb[6].mxu0  ;;  %v1195_v25 = vpop.f32.mrb[6].mxu1 }
 0x444   :  { %v3003_v40 = vadd.f32 %v1124_v2, %v3841_v36  ;;  %v1126_v44 = vpop.f32.mrb[7].mxu0  ;;  %v1197_v46 = vpop.f32.mrb[7].mxu1  ;;  %v3019_v5 = vadd.f32 %v1195_v25, %v3858_v1 }
 0x445   :  { %v3004_v47 = vadd.f32 %v1126_v44, %v3845_v38  ;;  %v3020_v62 = vadd.f32 %v1197_v46, %v3852_v58 }
 0x446   :  { %v2328_v52 = vmul.f32 -1.442695, %v3003_v40 }
 0x447   :  { %v2329_v56 = vmul.f32 -1.442695, %v3004_v47  ;;  %v2330_v53 = vmul.f32 -1.442695, %v3020_v62 }
 0x448   :  { %3129 = vpow2.f32 %v2328_v52 }
 0x449   :  { %3131 = vpow2.f32 %v2329_v56 }
 0x44a   :  { %3133 = vpow2.f32 %v2330_v53 }
 0x44b   :  { %3135 = vtanh.f32 %v3019_v5 }
 0x452   :  { %v3130_v34 = vpop.eup %3129 }
 0x453   :  { %v3132_v12 = vpop.eup %3131  ;;  %v1207_v13 = vadd.f32 1.0, %v3130_v34 }
 0x454   :  { %v1213_v18 = vadd.f32 1.0, %v3132_v12  ;;  %v3134_v9 = vpop.eup %3133 }
 0x455   :  { %3137 = vrcp.f32 %v1207_v13  ;;  %v3136_v21 = vpop.eup %3135  ;;  %v1220_v47 = vadd.f32 1.0, %v3134_v9 }
 0x456   :  { %3139 = vrcp.f32 %v1213_v18 }
 0x457   :  { %3141 = vrcp.f32 %v1220_v47 }
 0x45f   :  { %v3138_v2 = vpop.eup %3137 }
 0x460   :  { %v3140_v40 = vpop.eup %3139  ;;  %v1224_v44 = vmul.f32 %v3138_v2, %v3136_v21 }
 0x461   :  { %v1223_v52 = vmul.f32 %v3140_v40, %v3953_v16  ;;  %v3142_v25 = vpop.eup %3141 }
 0x463   :  { %v3999_v46 = vadd.f32 %v1224_v44, %v1223_v52 }
 0x465   :  { %3143 = vtanh.f32 %v3999_v46 }
 0x46f   :  { %v3144_v56 = vpop.eup %3143 }
 0x470   :  { %v4002_v62 = vmul.f32 %v3144_v56, %v3142_v25 }
 0x472   :  { %1302 = vmatmul.mubr.f32.vlgmr.msra.gmra.mrb[8].mxu0 %v4002_v62  ;;  %1373 = vmatmul.mubr.f32.vlgmr.msra.gmra.mrb[8].mxu1 %v4002_v62 }
 0x473   :  { %2784 = vmatpush1.bf16.msra.mxu0 %v3523_v48  ;;  %2816 = vmatpush1.bf16.msra.mxu1 %v3532_v51 }
 0x474   :  { %2786 = vmatprep.subr.bf16.mxu0 %v3541_v54  ;;  %2818 = vmatprep.subr.bf16.mxu1 %v3549_v57 }
 0x475   :  { %1480 = vmatprep.mubr.f32.mxu0 %v3246_v8  ;;  %1551 = vmatprep.mubr.f32.mxu1 %v3246_v8 }
 0x477   :  { %2788 = vmatpush1.bf16.msra.mxu0 %v3558_v61  ;;  %2820 = vmatpush1.bf16.msra.mxu1 %v3568_v0 }
 0x478   :  { %2790 = vmatprep.subr.bf16.mxu0 %v3578_v3  ;;  %2822 = vmatprep.subr.bf16.mxu1 %v3587_v6 }
 0x47b   :  { %2792 = vmatpush1.bf16.msra.mxu0 %v3596_v11  ;;  %2824 = vmatpush1.bf16.msra.mxu1 %v3606_v14 }
 0x47c   :  { %2794 = vmatprep.subr.bf16.mxu0 %v3616_v17  ;;  %2826 = vmatprep.subr.bf16.mxu1 %v3625_v20 }
 0x47f   :  { %2796 = vmatpush1.bf16.msra.mxu0 %v3634_v24  ;;  %2828 = vmatpush1.bf16.msra.mxu1 %v3644_v27 }
 0x480   :  { %2798 = vmatprep.subr.bf16.mxu0 %v3654_v30  ;;  %2830 = vmatprep.subr.bf16.mxu1 %v3663_v33 }
 0x483   :  { %2800 = vmatpush1.bf16.msra.mxu0 %v3672_v37  ;;  %2832 = vmatpush1.bf16.msra.mxu1 %v3682_v41 }
 0x484   :  { %2802 = vmatprep.subr.bf16.mxu0 %v3692_v45  ;;  %2834 = vmatprep.subr.bf16.mxu1 %v3701_v49 }
 0x487   :  { %2804 = vmatpush1.bf16.msra.mxu0 %v3710_v55  ;;  %2836 = vmatpush1.bf16.msra.mxu1 %v3720_v59 }
 0x488   :  { %2806 = vmatprep.subr.bf16.mxu0 %v3730_v63  ;;  %2838 = vmatprep.subr.bf16.mxu1 %v3739_v4 }
 0x48b   :  { %2808 = vmatpush1.bf16.msra.mxu0 %v3748_v10  ;;  %2840 = vmatpush1.bf16.msra.mxu1 %v3758_v15 }
 0x48c   :  { %2810 = vmatprep.subr.bf16.mxu0 %v3768_v19  ;;  %2842 = vmatprep.subr.bf16.mxu1 %v3777_v23 }
 0x48f   :  { %2812 = vmatpush1.bf16.msra.mxu0 %v3780_v26  ;;  %2844 = vmatpush1.bf16.msra.mxu1 %v3784_v28 }
 0x490   :  { %2846 = vmatprep.subr.bf16.mxu0 %v3501_v39  ;;  %2878 = vmatprep.subr.bf16.mxu1 %v3509_v42 }
 0x545   :  { %v1303_v16 = vpop.f32.mrb[8].mxu0  ;;  %v1374_v53 = vpop.f32.mrb[8].mxu1 }
 0x546   :  { %v3005_v5 = vadd.f32 %v1303_v16, %v3841_v36  ;;  %v1305_v34 = vpop.f32.mrb[9].mxu0  ;;  %v1376_v12 = vpop.f32.mrb[9].mxu1  ;;  %v3021_v40 = vadd.f32 %v1374_v53, %v3858_v1 }
 0x547   :  { %v3006_v13 = vadd.f32 %v1305_v34, %v3845_v38  ;;  %v3022_v21 = vadd.f32 %v1376_v12, %v3852_v58 }
 0x548   :  { %v2331_v18 = vmul.f32 -1.442695, %v3005_v5 }
 0x549   :  { %v2332_v9 = vmul.f32 -1.442695, %v3006_v13  ;;  %v2333_v2 = vmul.f32 -1.442695, %v3022_v21 }
 0x54a   :  { %3145 = vpow2.f32 %v2331_v18 }
 0x54b   :  { %3147 = vpow2.f32 %v2332_v9 }
 0x54c   :  { %3149 = vpow2.f32 %v2333_v2 }
 0x54d   :  { %3151 = vtanh.f32 %v3021_v40 }
 0x554   :  { %v3146_v44 = vpop.eup %3145 }
 0x555   :  { %v3148_v47 = vpop.eup %3147  ;;  %v1386_v52 = vadd.f32 1.0, %v3146_v44 }
 0x556   :  { %v1392_v25 = vadd.f32 1.0, %v3148_v47  ;;  %v3150_v56 = vpop.eup %3149 }
 0x557   :  { %3153 = vrcp.f32 %v1386_v52  ;;  %v3152_v16 = vpop.eup %3151  ;;  %v1399_v18 = vadd.f32 1.0, %v3150_v56 }
 0x558   :  { %3155 = vrcp.f32 %v1392_v25 }
 0x559   :  { %3157 = vrcp.f32 %v1399_v18 }
 0x561   :  { %v3154_v34 = vpop.eup %3153 }
 0x562   :  { %v3156_v5 = vpop.eup %3155  ;;  %v1403_v13 = vmul.f32 %v3154_v34, %v3152_v16 }
 0x563   :  { %v1402_v9 = vmul.f32 %v3156_v5, %v3999_v46  ;;  %v3158_v53 = vpop.eup %3157 }
 0x565   :  { %v4045_v12 = vadd.f32 %v1403_v13, %v1402_v9 }
 0x567   :  { %3159 = vtanh.f32 %v4045_v12 }
 0x571   :  { %v3160_v21 = vpop.eup %3159 }
 0x572   :  { %v4048_v2 = vmul.f32 %v3160_v21, %v3158_v53 }
 0x574   :  { %1481 = vmatmul.mubr.f32.vlgmr.msra.gmra.mrb[10].mxu0 %v4048_v2  ;;  %1552 = vmatmul.mubr.f32.vlgmr.msra.gmra.mrb[10].mxu1 %v4048_v2 }
 0x575   :  { %2848 = vmatpush1.bf16.msra.mxu0 %v3523_v48  ;;  %2880 = vmatpush1.bf16.msra.mxu1 %v3532_v51 }
 0x576   :  { %2850 = vmatprep.subr.bf16.mxu0 %v3541_v54  ;;  %2882 = vmatprep.subr.bf16.mxu1 %v3549_v57 }
 0x577   :  { %1659 = vmatprep.mubr.f32.mxu0 %v3246_v8  ;;  %1730 = vmatprep.mubr.f32.mxu1 %v3246_v8 }
 0x579   :  { %2852 = vmatpush1.bf16.msra.mxu0 %v3558_v61  ;;  %2884 = vmatpush1.bf16.msra.mxu1 %v3568_v0 }
 0x57a   :  { %2854 = vmatprep.subr.bf16.mxu0 %v3578_v3  ;;  %2886 = vmatprep.subr.bf16.mxu1 %v3587_v6 }
 0x57d   :  { %2856 = vmatpush1.bf16.msra.mxu0 %v3596_v11  ;;  %2888 = vmatpush1.bf16.msra.mxu1 %v3606_v14 }
 0x57e   :  { %2858 = vmatprep.subr.bf16.mxu0 %v3616_v17  ;;  %2890 = vmatprep.subr.bf16.mxu1 %v3625_v20 }
 0x581   :  { %2860 = vmatpush1.bf16.msra.mxu0 %v3634_v24  ;;  %2892 = vmatpush1.bf16.msra.mxu1 %v3644_v27 }
 0x582   :  { %2862 = vmatprep.subr.bf16.mxu0 %v3654_v30  ;;  %2894 = vmatprep.subr.bf16.mxu1 %v3663_v33 }
 0x585   :  { %2864 = vmatpush1.bf16.msra.mxu0 %v3672_v37  ;;  %2896 = vmatpush1.bf16.msra.mxu1 %v3682_v41 }
 0x586   :  { %2866 = vmatprep.subr.bf16.mxu0 %v3692_v45  ;;  %2898 = vmatprep.subr.bf16.mxu1 %v3701_v49 }
 0x589   :  { %2868 = vmatpush1.bf16.msra.mxu0 %v3710_v55  ;;  %2900 = vmatpush1.bf16.msra.mxu1 %v3720_v59 }
 0x58a   :  { %2870 = vmatprep.subr.bf16.mxu0 %v3730_v63  ;;  %2902 = vmatprep.subr.bf16.mxu1 %v3739_v4 }
 0x58d   :  { %2872 = vmatpush1.bf16.msra.mxu0 %v3748_v10  ;;  %2904 = vmatpush1.bf16.msra.mxu1 %v3758_v15 }
 0x58e   :  { %2874 = vmatprep.subr.bf16.mxu0 %v3768_v19  ;;  %2906 = vmatprep.subr.bf16.mxu1 %v3777_v23 }
 0x591   :  { %2876 = vmatpush1.bf16.msra.mxu0 %v3780_v26  ;;  %2908 = vmatpush1.bf16.msra.mxu1 %v3784_v28 }
 0x592   :  { %2910 = vmatprep.subr.bf16.mxu0 %v3501_v39  ;;  %2942 = vmatprep.subr.bf16.mxu1 %v3509_v42 }
 0x647   :  { %v1482_v46 = vpop.f32.mrb[10].mxu0  ;;  %v1553_v40 = vpop.f32.mrb[10].mxu1 }
 0x648   :  { %v3007_v44 = vadd.f32 %v1482_v46, %v3841_v36  ;;  %v1484_v47 = vpop.f32.mrb[11].mxu0  ;;  %v1555_v52 = vpop.f32.mrb[11].mxu1  ;;  %v3023_v13 = vadd.f32 %v1553_v40, %v3858_v1 }
 0x649   :  { %v3008_v25 = vadd.f32 %v1484_v47, %v3845_v38  ;;  %v3024_v34 = vadd.f32 %v1555_v52, %v3852_v58 }
 0x64a   :  { %v2334_v56 = vmul.f32 -1.442695, %v3007_v44 }
 0x64b   :  { %v2335_v16 = vmul.f32 -1.442695, %v3008_v25  ;;  %v2336_v5 = vmul.f32 -1.442695, %v3024_v34 }
 0x64c   :  { %3161 = vpow2.f32 %v2334_v56 }
 0x64d   :  { %3163 = vpow2.f32 %v2335_v16 }
 0x64e   :  { %3165 = vpow2.f32 %v2336_v5 }
 0x64f   :  { %3167 = vtanh.f32 %v3023_v13 }
 0x656   :  { %v3162_v39 = vpop.eup %3161 }
 0x657   :  { %v3164_v18 = vpop.eup %3163  ;;  %v1565_v42 = vadd.f32 1.0, %v3162_v39 }
 0x658   :  { %v1571_v9 = vadd.f32 1.0, %v3164_v18  ;;  %v3166_v53 = vpop.eup %3165 }
 0x659   :  { %3169 = vrcp.f32 %v1565_v42  ;;  %v3168_v21 = vpop.eup %3167  ;;  %v1578_v25 = vadd.f32 1.0, %v3166_v53 }
 0x65a   :  { %3171 = vrcp.f32 %v1571_v9 }
 0x65b   :  { %3173 = vrcp.f32 %v1578_v25 }
 0x663   :  { %v3170_v46 = vpop.eup %3169 }
 0x664   :  { %v3172_v44 = vpop.eup %3171  ;;  %v1582_v47 = vmul.f32 %v3170_v46, %v3168_v21 }
 0x665   :  { %v1581_v56 = vmul.f32 %v3172_v44, %v4045_v12  ;;  %v3174_v40 = vpop.eup %3173 }
 0x667   :  { %v4091_v52 = vadd.f32 %v1582_v47, %v1581_v56 }
 0x669   :  { %3175 = vtanh.f32 %v4091_v52 }
 0x673   :  { %v3176_v16 = vpop.eup %3175 }
 0x674   :  { %v4094_v34 = vmul.f32 %v3176_v16, %v3174_v40 }
 0x676   :  { %1660 = vmatmul.mubr.f32.vlgmr.msra.gmra.mrb[12].mxu0 %v4094_v34  ;;  %1731 = vmatmul.mubr.f32.vlgmr.msra.gmra.mrb[12].mxu1 %v4094_v34 }
 0x677   :  { %2912 = vmatpush1.bf16.msra.mxu0 %v3523_v48  ;;  %2944 = vmatpush1.bf16.msra.mxu1 %v3532_v51 }
 0x678   :  { %2914 = vmatprep.subr.bf16.mxu0 %v3541_v54  ;;  %2946 = vmatprep.subr.bf16.mxu1 %v3549_v57 }
 0x679   :  { %1838 = vmatprep.mubr.f32.mxu0 %v3246_v8  ;;  %1909 = vmatprep.mubr.f32.mxu1 %v3246_v8 }
 0x67b   :  { %2916 = vmatpush1.bf16.msra.mxu0 %v3558_v61  ;;  %2948 = vmatpush1.bf16.msra.mxu1 %v3568_v0 }
 0x67c   :  { %2918 = vmatprep.subr.bf16.mxu0 %v3578_v3  ;;  %2950 = vmatprep.subr.bf16.mxu1 %v3587_v6 }
 0x67f   :  { %2920 = vmatpush1.bf16.msra.mxu0 %v3596_v11  ;;  %2952 = vmatpush1.bf16.msra.mxu1 %v3606_v14 }
 0x680   :  { %2922 = vmatprep.subr.bf16.mxu0 %v3616_v17  ;;  %2954 = vmatprep.subr.bf16.mxu1 %v3625_v20 }
 0x683   :  { %2924 = vmatpush1.bf16.msra.mxu0 %v3634_v24  ;;  %2956 = vmatpush1.bf16.msra.mxu1 %v3644_v27 }
 0x684   :  { %2926 = vmatprep.subr.bf16.mxu0 %v3654_v30  ;;  %2958 = vmatprep.subr.bf16.mxu1 %v3663_v33 }
 0x687   :  { %2928 = vmatpush1.bf16.msra.mxu0 %v3672_v37  ;;  %2960 = vmatpush1.bf16.msra.mxu1 %v3682_v41 }
 0x688   :  { %2930 = vmatprep.subr.bf16.mxu0 %v3692_v45  ;;  %2962 = vmatprep.subr.bf16.mxu1 %v3701_v49 }
 0x68b   :  { %2932 = vmatpush1.bf16.msra.mxu0 %v3710_v55  ;;  %2964 = vmatpush1.bf16.msra.mxu1 %v3720_v59 }
 0x68c   :  { %2934 = vmatprep.subr.bf16.mxu0 %v3730_v63  ;;  %2966 = vmatprep.subr.bf16.mxu1 %v3739_v4 }
 0x68f   :  { %2936 = vmatpush1.bf16.msra.mxu0 %v3748_v10  ;;  %2968 = vmatpush1.bf16.msra.mxu1 %v3758_v15 }
 0x690   :  { %2938 = vmatprep.subr.bf16.mxu0 %v3768_v19  ;;  %2970 = vmatprep.subr.bf16.mxu1 %v3777_v23 }
 0x693   :  { %2940 = vmatpush1.bf16.msra.mxu0 %v3780_v26  ;;  %2972 = vmatpush1.bf16.msra.mxu1 %v3784_v28 }
 0x749   :  { %v1661_v48 = vpop.f32.mrb[12].mxu0  ;;  %v1732_v51 = vpop.f32.mrb[12].mxu1 }
 0x74a   :  { %v3009_v54 = vadd.f32 %v1661_v48, %v3841_v36  ;;  %v1663_v57 = vpop.f32.mrb[13].mxu0  ;;  %v1734_v61 = vpop.f32.mrb[13].mxu1  ;;  %v3025_v17 = vadd.f32 %v1732_v51, %v3858_v1 }
 0x74b   :  { %v3010_v0 = vadd.f32 %v1663_v57, %v3845_v38  ;;  %v3026_v11 = vadd.f32 %v1734_v61, %v3852_v58 }
 0x74c   :  { %v2337_v3 = vmul.f32 -1.442695, %v3009_v54 }
 0x74d   :  { %v2338_v6 = vmul.f32 -1.442695, %v3010_v0  ;;  %v2339_v14 = vmul.f32 -1.442695, %v3026_v11 }
 0x74e   :  { %3177 = vpow2.f32 %v2337_v3 }
 0x74f   :  { %3179 = vpow2.f32 %v2338_v6 }
 0x750   :  { %3181 = vpow2.f32 %v2339_v14  ;;  %v1987_v14 = vand.u32 127, %v173_v29 }
 0x751   :  { %3183 = vtanh.f32 %v3025_v17 }
 0x758   :  { %v3178_v20 = vpop.eup %3177 }
 0x759   :  { %v3180_v24 = vpop.eup %3179  ;;  %v1744_v27 = vadd.f32 1.0, %v3178_v20 }
 0x75a   :  { %v1750_v30 = vadd.f32 1.0, %v3180_v24  ;;  %v3182_v33 = vpop.eup %3181  ;;  %v1990_v24 = vsub.s32 %v1987_v14, %v3832_v31 }
 0x75b   :  { %3185 = vrcp.f32 %v1744_v27  ;;  %v3184_v37 = vpop.eup %3183  ;;  %v1757_v55 = vadd.f32 1.0, %v3182_v33 }
 0x75c   :  { %3187 = vrcp.f32 %v1750_v30 }
 0x75d   :  { %3189 = vrcp.f32 %v1757_v55 }
 0x765   :  { %v3186_v41 = vpop.eup %3185 }
 0x766   :  { %v3188_v45 = vpop.eup %3187  ;;  %v1761_v49 = vmul.f32 %v3186_v41, %v3184_v37 }
 0x767   :  { %v1760_v59 = vmul.f32 %v3188_v45, %v4091_v52  ;;  %v3190_v4 = vpop.eup %3189 }
 0x769   :  { %v1762_v63 = vadd.f32 %v1761_v49, %v1760_v59 }
 0x76b   :  { %3191 = vtanh.f32 %v1762_v63 }
 0x775   :  { %v3192_v10 = vpop.eup %3191 }
 0x776   :  { %v4135_v15 = vmul.f32 %v3192_v10, %v3190_v4 }
 0x778   :  { %1839 = vmatmul.mubr.f32.vlgmr.msra.gmra.mrb[14].mxu0 %v4135_v15  ;;  %1910 = vmatmul.mubr.f32.vlgmr.msra.gmra.mrb[14].mxu1 %v4135_v15 }
 0x779   :  { %2394 = vmatprep.mubr.msk.f32.mxu0 %vm3248_vm8, %v3246_v8 }
 0x84b   :  { %v1840_v19 = vpop.f32.mrb[14].mxu0  ;;  %v1911_v23 = vpop.f32.mrb[14].mxu1 }
 0x84c   :  { %v3011_v26 = vadd.f32 %v1840_v19, %v3841_v36  ;;  %v1842_v28 = vpop.f32.mrb[15].mxu0  ;;  %v1913_v12 = vpop.f32.mrb[15].mxu1  ;;  %v3027_v9 = vadd.f32 %v1911_v23, %v3858_v1 }
 0x84d   :  { %v3012_v5 = vadd.f32 %v1842_v28, %v3845_v38  ;;  %v3028_v18 = vadd.f32 %v1913_v12, %v3852_v58 }
 0x84e   :  { %v2340_v13 = vmul.f32 -1.442695, %v3011_v26 }
 0x84f   :  { %v2341_v39 = vmul.f32 -1.442695, %v3012_v5  ;;  %v2342_v42 = vmul.f32 -1.442695, %v3028_v18 }
 0x850   :  { %3193 = vpow2.f32 %v2340_v13 }
 0x851   :  { %3195 = vpow2.f32 %v2341_v39 }
 0x852   :  { %3197 = vpow2.f32 %v2342_v42 }
 0x853   :  { %3199 = vtanh.f32 %v3027_v9 }
 0x85a   :  { %v3194_v53 = vpop.eup %3193 }
 0x85b   :  { %v3196_v21 = vpop.eup %3195  ;;  %v1923_v46 = vadd.f32 1.0, %v3194_v53 }
 0x85c   :  { %v1929_v44 = vadd.f32 1.0, %v3196_v21  ;;  %v3198_v36 = vpop.eup %3197 }
 0x85d   :  { %3201 = vrcp.f32 %v1923_v46  ;;  %v3200_v47 = vpop.eup %3199  ;;  %v1936_v52 = vadd.f32 1.0, %v3198_v36 }
 0x85e   :  { %3203 = vrcp.f32 %v1929_v44 }
 0x85f   :  { %3205 = vrcp.f32 %v1936_v52 }
 0x867   :  { %v3202_v38 = vpop.eup %3201 }
 0x868   :  { %v3204_v25 = vpop.eup %3203  ;;  %v1940_v56 = vmul.f32 %v3202_v38, %v3200_v47 }
 0x869   :  { %v1939_v40 = vmul.f32 %v3204_v25, %v1762_v63  ;;  %v3206_v58 = vpop.eup %3205 }
 0x86b   :  { %v1941_v16 = vadd.f32 %v1940_v56, %v1939_v40  ;;  %v2185_v40 = vld [vmem:[%s4243_s5] sm:$0xff] }
 0x86d   :  { %3207 = vtanh.f32 %v1941_v16  ;;  %v2186_v16 = vld [vmem:[%s4243_s5 + $0x8] sm:$0xff] }
 0x877   :  { %v3208_v1 = vpop.eup %3207 }
 0x878   :  { %v4143_v48 = vmul.f32 %v3208_v1, %v3206_v58  ;;  %v2187_v58 = vld [vmem:[%s4243_s5 + $0x10] sm:$0xff]  ;;  %v3247_v1 = vmov 0.0|0.0  }
 0x879   :  { %2973 = vmatprep.subr.bf16.mxu0 %v3247_v1 }
 0x87a   :  { %v1956_v51 = vmul.f32 %v4143_v48, %v3956_v22  ;;  %v1954_v54 = vmul.f32 %v4143_v48, %v3864_v50  ;;  %v1957_v57 = vmul.f32 %v4143_v48, %v4002_v62  ;;  %v1955_v61 = vmul.f32 %v4143_v48, %v3910_v7 }
 0x87b   :  { %v1959_v0 = vmul.f32 %v4143_v48, %v4094_v34  ;;  %v1958_v3 = vmul.f32 %v4143_v48, %v4048_v2  ;;  %v1961_v6 = vmul.f32 %v4143_v48, %v4143_v48  ;;  %v1960_v11 = vmul.f32 %v4143_v48, %v4135_v15 }
 0x87c   :  { %1966 = vadd.xlane.f32.xlu1 %v1956_v51  ;;  %1962 = vadd.xlane.f32.xlu0 %v1954_v54  ;;  %v2974_v51 = vpack.c.bf16 %v2186_v16, %v2185_v40  ;;  %v2188_v54 = vld [vmem:[%s4243_s5 + $0x18] sm:$0xff] }
 0x87e   :  { %2975 = vmatpush3.bf16.msra.mxu0 %v2974_v51 }
 0x87f   :  { %2976 = vmatprep.subr.bf16.mxu0 %v3247_v1 }
 0x880   :  { %1968 = vadd.xlane.f32.xlu1 %v1957_v57  ;;  %1964 = vadd.xlane.f32.xlu0 %v1955_v61  ;;  %v2977_v57 = vpack.c.bf16 %v2188_v54, %v2187_v58  ;;  %v2189_v61 = vld [vmem:[%s4243_s5 + $0x20] sm:$0xff] }
 0x882   :  { %2978 = vmatpush3.bf16.msra.mxu0 %v2977_v57 }
 0x883   :  { %2979 = vmatprep.subr.bf16.mxu0 %v3247_v1 }
 0x884   :  { %1972 = vadd.xlane.f32.xlu1 %v1959_v0  ;;  %1970 = vadd.xlane.f32.xlu0 %v1958_v3  ;;  %v2190_v0 = vld [vmem:[%s4243_s5 + $0x28] sm:$0xff] }
 0x885   :  { %v2980_v3 = vpack.c.bf16 %v2190_v0, %v2189_v61 }
 0x887   :  { %2981 = vmatpush3.bf16.msra.mxu0 %v2980_v3 }
 0x888   :  { %1976 = vadd.xlane.f32.xlu1 %v1961_v6  ;;  %1974 = vadd.xlane.f32.xlu0 %v1960_v11  ;;  %v2191_v6 = vld [vmem:[%s4243_s5 + $0x30] sm:$0xff]  ;;  %v2192_v11 = vld [vmem:[%s4243_s5 + $0x38] sm:$0xff] }
 0x889   :  { %v2983_v14 = vpack.c.bf16 %v2192_v11, %v2191_v6  ;;  %2982 = vmatprep.subr.bf16.mxu0 %v3247_v1 }
 0x88b   :  { %2984 = vmatpush3.bf16.msra.mxu0 %v2983_v14 }
 0x88c   :  { %2985 = vmatprep.subr.bf16.mxu0 %v3247_v1 }
 0x909   :  { %v1967_v17 = vpop.xlane.xlu1 %1966  ;;  %v1963_v20 = vpop.xlane.xlu0 %1962 }
 0x90a   :  { %v1991_v33 = vrot.slane %v1963_v20, %v1990_v24  ;;  %v1999_v41 = vrot.slane %v1967_v17, %v1990_v24  ;;  %v2193_v17 = vld [vmem:[%s4243_s5 + $0x40] sm:$0xff]  ;;  %v2194_v20 = vld [vmem:[%s4243_s5 + $0x48] sm:$0xff] }
 0x90d   :  { %v1969_v27 = vpop.xlane.xlu1 %1968  ;;  %v1965_v30 = vpop.xlane.xlu0 %1964 }
 0x90e   :  { %v1995_v37 = vrot.slane %v1965_v30, %v1990_v24  ;;  %v2003_v45 = vrot.slane %v1969_v27, %v1990_v24  ;;  %v2195_v27 = vld [vmem:[%s4243_s5 + $0x50] sm:$0xff]  ;;  %v2196_v30 = vld [vmem:[%s4243_s5 + $0x58] sm:$0xff] }
 0x910   :  { %v2021_v49 = vsel %vm2020_vm0, %v1995_v37, %v1991_v33  ;;  %v2989_v33 = vpack.c.bf16 %v2196_v30, %v2195_v27  ;;  %v2197_v37 = vld [vmem:[%s4243_s5 + $0x60] sm:$0xff] }
 0x911   :  { %v2023_v55 = vsel %vm2022_vm1, %v1999_v41, %v2021_v49  ;;  %v1973_v59 = vpop.xlane.xlu1 %1972  ;;  %v1971_v63 = vpop.xlane.xlu0 %1970  ;;  %v2198_v41 = vld [vmem:[%s4243_s5 + $0x68] sm:$0xff] }
 0x912   :  { %v2025_v4 = vsel %vm2024_vm2, %v2003_v45, %v2023_v55  ;;  %v2007_v29 = vrot.slane %v1971_v63, %v1990_v24  ;;  %v2011_v10 = vrot.slane %v1973_v59, %v1990_v24  ;;  %v2992_v49 = vpack.c.bf16 %v2198_v41, %v2197_v37  ;;  %v2199_v63 = vld [vmem:[%s4243_s5 + $0x70] sm:$0xff] }
 0x914   :  { %v2027_v19 = vsel %vm2026_vm3, %v2007_v29, %v2025_v4  ;;  %v2200_v4 = vld [vmem:[%s4243_s5 + $0x78] sm:$0xff] }
 0x915   :  { %v1977_v23 = vpop.xlane.xlu1 %1976  ;;  %v1975_v26 = vpop.xlane.xlu0 %1974  ;;  %v2029_v5 = vsel %vm2028_vm4, %v2011_v10, %v2027_v19  ;;  %v2995_v29 = vpack.c.bf16 %v2200_v4, %v2199_v63  ;;  %v2144_v19 = vsub.s32 4, %v3832_v31 }
 0x916   :  { %v2019_v28 = vrot.slane %v1977_v23, %v1990_v24  ;;  %v2015_v12 = vrot.slane %v1975_v26, %v1990_v24  ;;  %v2986_v24 = vpack.c.bf16 %v2194_v20, %v2193_v17 }
 0x918   :  { %v2031_v13 = vsel %vm2030_vm5, %v2015_v12, %v2029_v5  ;;  %2987 = vmatpush3.bf16.msra.mxu0 %v2986_v24  ;;  %v2158_v12 = vsub.s32 6, %v3832_v31 }
 0x919   :  { %v2033_v39 = vsel %vm2032_vm6, %v2019_v28, %v2031_v13  ;;  %2988 = vmatprep.subr.bf16.mxu0 %v3247_v1  ;;  %v2165_v28 = vsub.s32 7, %v3832_v31 }
 0x91a   :  { %2035 = vxpose.xlu0.b32.start.end [1/1] (short) (narrow) %v2033_v39, 8 }
 0x91c   :  { %2990 = vmatpush3.bf16.msra.mxu0 %v2989_v33 }
 0x91d   :  { %2991 = vmatprep.subr.bf16.mxu0 %v3247_v1 }
 0x920   :  { %2993 = vmatpush3.bf16.msra.mxu0 %v2992_v49 }
 0x921   :  { %2994 = vmatprep.subr.bf16.mxu0 %v3247_v1 }
 0x924   :  { %2996 = vmatpush3.bf16.msra.mxu0 %v2995_v29 }
 0x99a   :  { %v2051_v18 = vpop.trf.xlu0 }
 0x99b   :  { %v2068_v42 = vsel %vm2067_vm7, %v2051_v18, -inf }
 0x99c   :  { %2069 = vmax.xlane.f32.xlu1 %v2068_v42 }
 0xa29   :  { %v2070_v9 = vpop.xlane.xlu1 %2069 }
 0xa2a   :  { %v2071_v53 = vsub.f32 %v2051_v18, %v2070_v9 }
 0xa2c   :  { %v2072_v21 = vmul.f32 1.442695, %v2071_v53 }
 0xa2e   :  { %3209 = vpow2.f32 %v2072_v21 }
 0xa38   :  { %v3210_v46 = vpop.eup %3209 }
 0xa39   :  { %v2074_v44 = vsel %vm2067_vm7, %v3210_v46, 0.0 }
 0xa3a   :  { %2075 = vadd.xlane.f32.xlu1 %v2074_v44 }
 0xac7   :  { %v2076_v36 = vpop.xlane.xlu1 %2075 }
 0xac8   :  { %3211 = vrcp.f32 %v2076_v36 }
 0xad2   :  { %v3212_v47 = vpop.eup %3211 }
 0xad3   :  { %v2078_v38 = vmul.f32 %v3212_v47, %v2076_v36 }
 0xad5   :  { %v2079_v25 = vsub.f32 2.0, %v2078_v38 }
 0xad7   :  { %v2080_v56 = vmul.f32 %v3212_v47, %v2079_v25 }
 0xad9   :  { %v2081_v52 = vmul.f32 %v3210_v46, %v2080_v56 }
 0xadb   :  { %2082 = vxpose.xlu1.b32.start.end [1/1] (short) (narrow) %v2081_v52, 8 }
 0xb5b   :  { %v2098_v45 = vpop.trf.xlu1 }
 0xb5c   :  { %v2124_v55 = vrot.slane %v2098_v45, %v179_v35  ;;  %v2117_v59 = vrot.slane %v2098_v45, %v175_v32  ;;  %v2138_v10 = vrot.slane %v2098_v45, %v187_v43  ;;  %v2131_v35 = vrot.slane %v2098_v45, %v183_v60 }
 0xb5d   :  { %v2151_v32 = vsub.s32 5, %v3832_v31  ;;  %v2145_v26 = vrot.slane %v2098_v45, %v2144_v19  ;;  %v2166_v43 = vrot.slane %v2098_v45, %v2165_v28  ;;  %v2159_v60 = vrot.slane %v2098_v45, %v2158_v12 }
 0xb5e   :  { %2126 = vbcast.lane.b32.xlu1 %v2124_v55, 256  ;;  %2119 = vbcast.lane.b32.xlu0 %v2117_v59, 256 }
 0xb5f   :  { %v2152_v23 = vrot.slane %v2098_v45, %v2151_v32 }
 0xb62   :  { %2140 = vbcast.lane.b32.xlu1 %v2138_v10, 256  ;;  %2133 = vbcast.lane.b32.xlu0 %v2131_v35, 256 }
 0xb66   :  { %2154 = vbcast.lane.b32.xlu1 %v2152_v23, 256  ;;  %2147 = vbcast.lane.b32.xlu0 %v2145_v26, 256 }
 0xb6a   :  { %2168 = vbcast.lane.b32.xlu1 %v2166_v43, 256  ;;  %2161 = vbcast.lane.b32.xlu0 %v2159_v60, 256 }
 0xbd0   :  { %v2127_v5 = vpop.permute.xlu1 %2126  ;;  %v2120_v13 = vpop.permute.xlu0 %2119 }
 0xbd1   :  { %v2171_v39 = vmul.f32 %v2127_v5, %v3910_v7  ;;  %v2170_v18 = vmul.f32 %v2120_v13, %v3864_v50 }
 0xbd3   :  { %v2178_v9 = vadd.f32 %v2171_v39, %v2170_v18 }
 0xbd4   :  { %v2141_v42 = vpop.permute.xlu1 %2140  ;;  %v2134_v8 = vpop.permute.xlu0 %2133 }
 0xbd5   :  { %v2172_v53 = vmul.f32 %v2134_v8, %v3956_v22  ;;  %v2173_v21 = vmul.f32 %v2141_v42, %v4002_v62  ;;  %v2343_v62 = vld [vmem:[%s4244_s6] ss:$0 sm:$0xff] }
 0xbd7   :  { %v2179_v31 = vadd.f32 %v2178_v9, %v2172_v53 }
 0xbd8   :  { %v2155_v46 = vpop.permute.xlu1 %2154  ;;  %v2148_v44 = vpop.permute.xlu0 %2147 }
 0xbd9   :  { %v2180_v36 = vadd.f32 %v2179_v31, %v2173_v21  ;;  %v2174_v47 = vmul.f32 %v2148_v44, %v4048_v2  ;;  %v2175_v38 = vmul.f32 %v2155_v46, %v4094_v34 }
 0xbdb   :  { %v2181_v25 = vadd.f32 %v2180_v36, %v2174_v47 }
 0xbdc   :  { %v2169_v56 = vpop.permute.xlu1 %2168  ;;  %v2162_v7 = vpop.permute.xlu0 %2161 }
 0xbdd   :  { %v2182_v52 = vadd.f32 %v2181_v25, %v2175_v38  ;;  %v2176_v50 = vmul.f32 %v2162_v7, %v4135_v15  ;;  %v2177_v40 = vmul.f32 %v2169_v56, %v4143_v48 }
 0xbdf   :  { %v2183_v16 = vadd.f32 %v2182_v52, %v2176_v50 }
 0xbe1   :  { %v2184_v22 = vadd.f32 %v2183_v16, %v2177_v40 }
 0xbe3   :  { %2395 = vmatmul.mubr.f32.vlgmr.msra.gmra.mrb[16].mxu0 %v2184_v22 }
 0xcb6   :  { %v2274_v58 = vpop.f32.mrb[16].mxu0 }
 0xcb7   :  { %v2275_v1 = vadd.f32 %v2343_v62, %v2274_v58  ;;  %v2396_v2 = vpop.f32.mrb[17].mxu0 }
 0xcb9   :  { %2278 = vst [vmem:[%s4245_s7] sm:$0xff] %v2275_v1 }
 0xcba   :  { %2283 = vsyncpa [#allocation7], 1 }
 0xcbb   :  { %2284 = vsyncmov [#allocation5] }
 0xcbe   :  { %s2285_s19 = vpop.sfrf %2284 }
 0xcbf   :  { %p2344_p7 = scmp.ne.s32.totalorder %s2285_s19, 0 }
 0xcc1   :  { %2289 = shalt.err (%p2344_p7)  }

</bundles_post_ra>
